<compile_context>
chip_gen: v7x
topology: tpu7x:2x2x1
jax: 0.10.0
libtpu: 0.0.40
codegen_flags: <defaults>
</compile_context>

<pallas_src>
import functools
import math

import jax
import jax.numpy as jnp
from jax.experimental import pallas as pl
from jax.experimental.pallas import tpu as pltpu


def _round_up(x, m):
    return ((x + m - 1) // m) * m


def _aspp_kernel(x_ref, w_ref, b_ref, out_ref, acc_ref, *,
                 row_tile, wout, kh_size, kw_size, dilation):
    """One (batch, row-tile, Cout-tile, Cin-chunk) grid step.

    x_ref  : (1, Hp, Wp, Cin_t)    padded input rows for this batch / Cin chunk
    w_ref  : (KH, KW, Cin_t, Cout_t) BN-scale-folded conv weights (bf16)
    b_ref  : (1, Cout_t)           folded BN bias (f32)
    out_ref: (1, TH, Wout, Cout_t)
    acc_ref: (TH*Wout, Cout_t)     f32 accumulator scratch (VMEM)
    """
    k = pl.program_id(3)

    @pl.when(k == 0)
    def _init():
        acc_ref[...] = jnp.zeros_like(acc_ref)

    cin_t = x_ref.shape[-1]
    # Output-row offset of this tile inside the padded input (TH-aligned).
    row0 = pl.multiple_of(pl.program_id(1) * row_tile, row_tile)

    # Dilated conv as a sum of per-tap matmuls, contracting only over Cin.
    for kh in range(kh_size):
        for kw in range(kw_size):
            xs = x_ref[0,
                       pl.ds(row0 + kh * dilation, row_tile),
                       kw * dilation:kw * dilation + wout,
                       :]                                   # (TH, Wout, Cin_t)
            xs = xs.reshape(row_tile * wout, cin_t)         # layout-preserving
            acc_ref[...] += jnp.dot(xs, w_ref[kh, kw],
                                    preferred_element_type=jnp.float32)

    @pl.when(k == pl.num_programs(3) - 1)
    def _finalize():
        y = acc_ref[...] + b_ref[...]                       # folded BN bias
        y = jnp.maximum(y, 0.0)                             # ReLU
        out_ref[...] = y.reshape(out_ref.shape).astype(out_ref.dtype)


def aspp_forward(x_nchw, weight_oihw, gamma, beta, running_mean, running_var,
                 *, padding, dilation, eps=1e-5,
                 row_tile=8, cout_tile=128, cin_tile=512):
    N, Cin, H, W = x_nchw.shape
    Cout, Cin_w, KH, KW = weight_oihw.shape
    assert Cin == Cin_w

    # Conv2d (stride=1) output size.
    Hout = H + 2 * padding - dilation * (KH - 1)
    Wout = W + 2 * padding - dilation * (KW - 1)

    # Tile sizes / padded extents (lane- & sublane-friendly).
    TH = row_tile
    TCO = cout_tile
    TCI = min(cin_tile, Cin)
    Cin_p = _round_up(Cin, TCI)
    Cout_p = _round_up(Cout, TCO)
    Hout_p = _round_up(Hout, TH)
    Wout_p = _round_up(Wout, 8)

    # Padded input extents (include the dilation halo + tiling slack).
    Hp = Hout_p + dilation * (KH - 1)
    Wp = Wout_p + dilation * (KW - 1)

    # NCHW -> NHWC, bf16, zero-pad spatial dims + Cin.
    # TODO(synk): if the caller can provide NHWC directly, these wrapper passes
    # (transpose + pad) can be dropped / fused.
    x = jnp.transpose(x_nchw, (0, 2, 3, 1)).astype(jnp.bfloat16)
    xpad = jnp.pad(x, ((0, 0),
                       (padding, Hp - H - padding),
                       (padding, Wp - W - padding),
                       (0, Cin_p - Cin)))

    # Fold inference BatchNorm into per-channel scale/bias; fold the scale into
    # the conv weights so the kernel only adds bias.
    inv_std = 1.0 / jnp.sqrt(running_var.astype(jnp.float32) + eps)
    scale = gamma.astype(jnp.float32) * inv_std                     # (Cout,)
    bias = beta.astype(jnp.float32) - running_mean.astype(jnp.float32) * scale

    # OIHW -> (KH, KW, Cin, Cout), fold scale, pad channels, cast bf16.
    w = jnp.transpose(weight_oihw, (2, 3, 1, 0)).astype(jnp.float32)
    w = w * scale[None, None, None, :]
    w = jnp.pad(w, ((0, 0), (0, 0), (0, Cin_p - Cin), (0, Cout_p - Cout)))
    w = w.astype(jnp.bfloat16)

    bias_p = jnp.pad(bias, (0, Cout_p - Cout)).reshape(1, Cout_p)

    grid = (N, Hout_p // TH, Cout_p // TCO, Cin_p // TCI)

    kernel = functools.partial(_aspp_kernel, row_tile=TH, wout=Wout_p,
                               kh_size=KH, kw_size=KW, dilation=dilation)

    out_nhwc = pl.pallas_call(
        kernel,
        out_shape=jax.ShapeDtypeStruct((N, Hout_p, Wout_p, Cout_p),
                                       x_nchw.dtype),
        grid=grid,
        in_specs=[
            pl.BlockSpec((1, Hp, Wp, TCI), lambda n, i, j, k: (n, 0, 0, k)),
            pl.BlockSpec((KH, KW, TCI, TCO), lambda n, i, j, k: (0, 0, k, j)),
            pl.BlockSpec((1, TCO), lambda n, i, j, k: (0, j)),
        ],
        out_specs=pl.BlockSpec((1, TH, Wout_p, TCO),
                               lambda n, i, j, k: (n, i, 0, j)),
        scratch_shapes=[pltpu.VMEM((TH * Wout_p, TCO), jnp.float32)],
        compiler_params=pltpu.CompilerParams(
            dimension_semantics=("parallel", "parallel", "parallel",
                                 "arbitrary"),
            vmem_limit_bytes=32 * 1024 * 1024),
    )(xpad, w, bias_p)

    # Slice off the Cout / spatial padding, NHWC -> NCHW.
    out_nhwc = out_nhwc[:, :Hout, :Wout, :Cout]
    return jnp.transpose(out_nhwc, (0, 3, 1, 2))


def _reference(x_nchw, weight_oihw, gamma, beta, running_mean, running_var,
               *, padding, dilation, eps=1e-5):
    y = jax.lax.conv_general_dilated(
        x_nchw, weight_oihw,
        window_strides=(1, 1),
        padding=((padding, padding), (padding, padding)),
        rhs_dilation=(dilation, dilation),
        dimension_numbers=("NCHW", "OIHW", "NCHW"))
    g = gamma.reshape(1, -1, 1, 1)
    b = beta.reshape(1, -1, 1, 1)
    m = running_mean.reshape(1, -1, 1, 1)
    v = running_var.reshape(1, -1, 1, 1)
    y = g * (y - m) / jnp.sqrt(v + eps) + b
    return jnp.maximum(y, 0.0)


if __name__ == "__main__":
    # Small shapes consistent with _ASPPModule(inplanes=4, planes=8,
    # kernel_size=3, padding=2, dilation=2).
    N, Cin, H, W = 2, 4, 16, 16
    Cout, K = 8, 3
    padding, dilation = 2, 2

    key = jax.random.PRNGKey(0)
    kx, kw = jax.random.split(key)

    x = jax.random.normal(kx, (N, Cin, H, W), dtype=jnp.float32)

    # kaiming_normal_ (fan_in, relu): std = sqrt(2 / (Cin * K * K)), weight OIHW.
    fan_in = Cin * K * K
    std = math.sqrt(2.0 / fan_in)
    weight = std * jax.random.normal(kw, (Cout, Cin, K, K), dtype=jnp.float32)

    # BatchNorm2d params as in _init_weight: gamma=1, beta=0; running stats 0/1.
    gamma = jnp.ones((Cout,), jnp.float32)
    beta = jnp.zeros((Cout,), jnp.float32)
    running_mean = jnp.zeros((Cout,), jnp.float32)
    running_var = jnp.ones((Cout,), jnp.float32)

    out = aspp_forward(x, weight, gamma, beta, running_mean, running_var,
                       padding=padding, dilation=dilation)
    out = jax.block_until_ready(out)

    ref = _reference(x, weight, gamma, beta, running_mean, running_var,
                     padding=padding, dilation=dilation)
    assert out.shape == ref.shape == (N, Cout, H, W), (out.shape, ref.shape)
    # bf16 inputs/weights (f32 accumulation) -> looser tolerance than pure f32.
    max_err = float(jnp.max(jnp.abs(out - ref)))
    assert jnp.allclose(out, ref, rtol=5e-2, atol=5e-2), max_err

    print("KERNEL_OK")
</pallas_src>

<mosaic_0001>
module attributes {stable_mosaic.version = 11 : i64} {
  func.func @_aspp_kernel(%arg0: i32, %arg1: i32, %arg2: i32, %arg3: i32, %arg4: memref<1x20x20x4xbf16, #tpu.memory_space<vmem>>, %arg5: memref<3x3x4x128xbf16, #tpu.memory_space<vmem>>, %arg6: memref<1x128xf32, #tpu.memory_space<vmem>>, %arg7: memref<1x8x16x128xf32, #tpu.memory_space<vmem>>, %arg8: memref<128x128xf32, #tpu.memory_space<vmem>>) attributes {dimension_semantics = [#tpu.dimension_semantics<parallel>, #tpu.dimension_semantics<parallel>, #tpu.dimension_semantics<parallel>, #tpu.dimension_semantics<arbitrary>], iteration_bounds = array<i64: 2, 2, 1, 1>, scalar_prefetch = 0 : i64, scratch_operands = 1 : i64, tpu.core_type = #tpu.core_type<tc>, window_params = [{transform_indices = @transform_0, window_bounds = array<i64: 1, 20, 20, 4>}, {transform_indices = @transform_1, window_bounds = array<i64: 3, 3, 4, 128>}, {transform_indices = @transform_2, window_bounds = array<i64: 1, 128>}, {transform_indices = @transform_3, window_bounds = array<i64: 1, 8, 16, 128>}]} {
    %c0_i32 = arith.constant 0 : i32
    %0 = arith.cmpi eq, %arg3, %c0_i32 : i32
    %1 = arith.extui %0 : i1 to i32
    %c0_i32_0 = arith.constant 0 : i32
    %2 = arith.cmpi ne, %1, %c0_i32_0 : i32
    scf.if %2 {
      %cst_113 = arith.constant 0.000000e+00 : f32
      %107 = vector.broadcast %cst_113 : f32 to vector<128x128xf32>
      %c0_114 = arith.constant 0 : index
      %c0_115 = arith.constant 0 : index
      %108 = vector.load %arg8[%c0_114, %c0_115] : memref<128x128xf32, #tpu.memory_space<vmem>>, vector<128x128xf32>
      tpu.vector_store %arg8[%c0_114, %c0_115], %107 {strides = array<i32>} : memref<128x128xf32, #tpu.memory_space<vmem>>, vector<128x128xf32>,
    } else {
    }
    %c8_i32 = arith.constant 8 : i32
    %3 = arith.muli %arg1, %c8_i32 : i32
    %4 = tpu.assume_multiple %3, 8 : i32
    %c0_i32_1 = arith.constant 0 : i32
    %5 = arith.addi %4, %c0_i32_1 : i32
    %c0 = arith.constant 0 : index
    %6 = arith.index_cast %5 : i32 to index
    %c0_2 = arith.constant 0 : index
    %c0_3 = arith.constant 0 : index
    %7 = vector.load %arg4[%c0, %6, %c0_2, %c0_3] : memref<1x20x20x4xbf16, #tpu.memory_space<vmem>>, vector<1x8x16x4xbf16>
    %8 = vector.shape_cast %7 : vector<1x8x16x4xbf16> to vector<8x16x4xbf16>
    %9 = vector.shape_cast %8 : vector<8x16x4xbf16> to vector<128x4xbf16>
    %c0_4 = arith.constant 0 : index
    %c0_5 = arith.constant 0 : index
    %10 = vector.load %arg8[%c0_4, %c0_5] : memref<128x128xf32, #tpu.memory_space<vmem>>, vector<128x128xf32>
    %c0_6 = arith.constant 0 : index
    %c0_7 = arith.constant 0 : index
    %c0_8 = arith.constant 0 : index
    %c0_9 = arith.constant 0 : index
    %11 = vector.load %arg5[%c0_6, %c0_7, %c0_8, %c0_9] : memref<3x3x4x128xbf16, #tpu.memory_space<vmem>>, vector<1x1x4x128xbf16>
    %12 = vector.shape_cast %11 : vector<1x1x4x128xbf16> to vector<4x128xbf16>
    %cst = arith.constant dense<0.000000e+00> : vector<128x128xf32>
    %13 = tpu.matmul %9, %12, %cst {dimension_numbers = #tpu.dot_dimension_numbers<[1], [0], [0], [1], [0, 0, 1, 1], [], []>} : vector<128x4xbf16>, vector<4x128xbf16>, vector<128x128xf32> -> vector<128x128xf32>
    %14 = arith.addf %10, %13 : vector<128x128xf32>
    %c0_10 = arith.constant 0 : index
    %c0_11 = arith.constant 0 : index
    %15 = vector.load %arg8[%c0_10, %c0_11] : memref<128x128xf32, #tpu.memory_space<vmem>>, vector<128x128xf32>
    tpu.vector_store %arg8[%c0_10, %c0_11], %14 {strides = array<i32>} : memref<128x128xf32, #tpu.memory_space<vmem>>, vector<128x128xf32>,
    %c0_i32_12 = arith.constant 0 : i32
    %16 = arith.addi %4, %c0_i32_12 : i32
    %c0_13 = arith.constant 0 : index
    %17 = arith.index_cast %16 : i32 to index
    %c2 = arith.constant 2 : index
    %c0_14 = arith.constant 0 : index
    %18 = vector.load %arg4[%c0_13, %17, %c2, %c0_14] : memref<1x20x20x4xbf16, #tpu.memory_space<vmem>>, vector<1x8x16x4xbf16>
    %19 = vector.shape_cast %18 : vector<1x8x16x4xbf16> to vector<8x16x4xbf16>
    %20 = vector.shape_cast %19 : vector<8x16x4xbf16> to vector<128x4xbf16>
    %c0_15 = arith.constant 0 : index
    %c0_16 = arith.constant 0 : index
    %21 = vector.load %arg8[%c0_15, %c0_16] : memref<128x128xf32, #tpu.memory_space<vmem>>, vector<128x128xf32>
    %c0_17 = arith.constant 0 : index
    %c1 = arith.constant 1 : index
    %c0_18 = arith.constant 0 : index
    %c0_19 = arith.constant 0 : index
    %22 = vector.load %arg5[%c0_17, %c1, %c0_18, %c0_19] : memref<3x3x4x128xbf16, #tpu.memory_space<vmem>>, vector<1x1x4x128xbf16>
    %23 = vector.shape_cast %22 : vector<1x1x4x128xbf16> to vector<4x128xbf16>
    %cst_20 = arith.constant dense<0.000000e+00> : vector<128x128xf32>
    %24 = tpu.matmul %20, %23, %cst_20 {dimension_numbers = #tpu.dot_dimension_numbers<[1], [0], [0], [1], [0, 0, 1, 1], [], []>} : vector<128x4xbf16>, vector<4x128xbf16>, vector<128x128xf32> -> vector<128x128xf32>
    %25 = arith.addf %21, %24 : vector<128x128xf32>
    %c0_21 = arith.constant 0 : index
    %c0_22 = arith.constant 0 : index
    %26 = vector.load %arg8[%c0_21, %c0_22] : memref<128x128xf32, #tpu.memory_space<vmem>>, vector<128x128xf32>
    tpu.vector_store %arg8[%c0_21, %c0_22], %25 {strides = array<i32>} : memref<128x128xf32, #tpu.memory_space<vmem>>, vector<128x128xf32>,
    %c0_i32_23 = arith.constant 0 : i32
    %27 = arith.addi %4, %c0_i32_23 : i32
    %c0_24 = arith.constant 0 : index
    %28 = arith.index_cast %27 : i32 to index
    %c4 = arith.constant 4 : index
    %c0_25 = arith.constant 0 : index
    %29 = vector.load %arg4[%c0_24, %28, %c4, %c0_25] : memref<1x20x20x4xbf16, #tpu.memory_space<vmem>>, vector<1x8x16x4xbf16>
    %30 = vector.shape_cast %29 : vector<1x8x16x4xbf16> to vector<8x16x4xbf16>
    %31 = vector.shape_cast %30 : vector<8x16x4xbf16> to vector<128x4xbf16>
    %c0_26 = arith.constant 0 : index
    %c0_27 = arith.constant 0 : index
    %32 = vector.load %arg8[%c0_26, %c0_27] : memref<128x128xf32, #tpu.memory_space<vmem>>, vector<128x128xf32>
    %c0_28 = arith.constant 0 : index
    %c2_29 = arith.constant 2 : index
    %c0_30 = arith.constant 0 : index
    %c0_31 = arith.constant 0 : index
    %33 = vector.load %arg5[%c0_28, %c2_29, %c0_30, %c0_31] : memref<3x3x4x128xbf16, #tpu.memory_space<vmem>>, vector<1x1x4x128xbf16>
    %34 = vector.shape_cast %33 : vector<1x1x4x128xbf16> to vector<4x128xbf16>
    %cst_32 = arith.constant dense<0.000000e+00> : vector<128x128xf32>
    %35 = tpu.matmul %31, %34, %cst_32 {dimension_numbers = #tpu.dot_dimension_numbers<[1], [0], [0], [1], [0, 0, 1, 1], [], []>} : vector<128x4xbf16>, vector<4x128xbf16>, vector<128x128xf32> -> vector<128x128xf32>
    %36 = arith.addf %32, %35 : vector<128x128xf32>
    %c0_33 = arith.constant 0 : index
    %c0_34 = arith.constant 0 : index
    %37 = vector.load %arg8[%c0_33, %c0_34] : memref<128x128xf32, #tpu.memory_space<vmem>>, vector<128x128xf32>
    tpu.vector_store %arg8[%c0_33, %c0_34], %36 {strides = array<i32>} : memref<128x128xf32, #tpu.memory_space<vmem>>, vector<128x128xf32>,
    %c2_i32 = arith.constant 2 : i32
    %38 = arith.addi %4, %c2_i32 : i32
    %c0_35 = arith.constant 0 : index
    %39 = arith.index_cast %38 : i32 to index
    %c0_36 = arith.constant 0 : index
    %c0_37 = arith.constant 0 : index
    %40 = vector.load %arg4[%c0_35, %39, %c0_36, %c0_37] : memref<1x20x20x4xbf16, #tpu.memory_space<vmem>>, vector<1x8x16x4xbf16>
    %41 = vector.shape_cast %40 : vector<1x8x16x4xbf16> to vector<8x16x4xbf16>
    %42 = vector.shape_cast %41 : vector<8x16x4xbf16> to vector<128x4xbf16>
    %c0_38 = arith.constant 0 : index
    %c0_39 = arith.constant 0 : index
    %43 = vector.load %arg8[%c0_38, %c0_39] : memref<128x128xf32, #tpu.memory_space<vmem>>, vector<128x128xf32>
    %c1_40 = arith.constant 1 : index
    %c0_41 = arith.constant 0 : index
    %c0_42 = arith.constant 0 : index
    %c0_43 = arith.constant 0 : index
    %44 = vector.load %arg5[%c1_40, %c0_41, %c0_42, %c0_43] : memref<3x3x4x128xbf16, #tpu.memory_space<vmem>>, vector<1x1x4x128xbf16>
    %45 = vector.shape_cast %44 : vector<1x1x4x128xbf16> to vector<4x128xbf16>
    %cst_44 = arith.constant dense<0.000000e+00> : vector<128x128xf32>
    %46 = tpu.matmul %42, %45, %cst_44 {dimension_numbers = #tpu.dot_dimension_numbers<[1], [0], [0], [1], [0, 0, 1, 1], [], []>} : vector<128x4xbf16>, vector<4x128xbf16>, vector<128x128xf32> -> vector<128x128xf32>
    %47 = arith.addf %43, %46 : vector<128x128xf32>
    %c0_45 = arith.constant 0 : index
    %c0_46 = arith.constant 0 : index
    %48 = vector.load %arg8[%c0_45, %c0_46] : memref<128x128xf32, #tpu.memory_space<vmem>>, vector<128x128xf32>
    tpu.vector_store %arg8[%c0_45, %c0_46], %47 {strides = array<i32>} : memref<128x128xf32, #tpu.memory_space<vmem>>, vector<128x128xf32>,
    %c2_i32_47 = arith.constant 2 : i32
    %49 = arith.addi %4, %c2_i32_47 : i32
    %c0_48 = arith.constant 0 : index
    %50 = arith.index_cast %49 : i32 to index
    %c2_49 = arith.constant 2 : index
    %c0_50 = arith.constant 0 : index
    %51 = vector.load %arg4[%c0_48, %50, %c2_49, %c0_50] : memref<1x20x20x4xbf16, #tpu.memory_space<vmem>>, vector<1x8x16x4xbf16>
    %52 = vector.shape_cast %51 : vector<1x8x16x4xbf16> to vector<8x16x4xbf16>
    %53 = vector.shape_cast %52 : vector<8x16x4xbf16> to vector<128x4xbf16>
    %c0_51 = arith.constant 0 : index
    %c0_52 = arith.constant 0 : index
    %54 = vector.load %arg8[%c0_51, %c0_52] : memref<128x128xf32, #tpu.memory_space<vmem>>, vector<128x128xf32>
    %c1_53 = arith.constant 1 : index
    %c1_54 = arith.constant 1 : index
    %c0_55 = arith.constant 0 : index
    %c0_56 = arith.constant 0 : index
    %55 = vector.load %arg5[%c1_53, %c1_54, %c0_55, %c0_56] : memref<3x3x4x128xbf16, #tpu.memory_space<vmem>>, vector<1x1x4x128xbf16>
    %56 = vector.shape_cast %55 : vector<1x1x4x128xbf16> to vector<4x128xbf16>
    %cst_57 = arith.constant dense<0.000000e+00> : vector<128x128xf32>
    %57 = tpu.matmul %53, %56, %cst_57 {dimension_numbers = #tpu.dot_dimension_numbers<[1], [0], [0], [1], [0, 0, 1, 1], [], []>} : vector<128x4xbf16>, vector<4x128xbf16>, vector<128x128xf32> -> vector<128x128xf32>
    %58 = arith.addf %54, %57 : vector<128x128xf32>
    %c0_58 = arith.constant 0 : index
    %c0_59 = arith.constant 0 : index
    %59 = vector.load %arg8[%c0_58, %c0_59] : memref<128x128xf32, #tpu.memory_space<vmem>>, vector<128x128xf32>
    tpu.vector_store %arg8[%c0_58, %c0_59], %58 {strides = array<i32>} : memref<128x128xf32, #tpu.memory_space<vmem>>, vector<128x128xf32>,
    %c2_i32_60 = arith.constant 2 : i32
    %60 = arith.addi %4, %c2_i32_60 : i32
    %c0_61 = arith.constant 0 : index
    %61 = arith.index_cast %60 : i32 to index
    %c4_62 = arith.constant 4 : index
    %c0_63 = arith.constant 0 : index
    %62 = vector.load %arg4[%c0_61, %61, %c4_62, %c0_63] : memref<1x20x20x4xbf16, #tpu.memory_space<vmem>>, vector<1x8x16x4xbf16>
    %63 = vector.shape_cast %62 : vector<1x8x16x4xbf16> to vector<8x16x4xbf16>
    %64 = vector.shape_cast %63 : vector<8x16x4xbf16> to vector<128x4xbf16>
    %c0_64 = arith.constant 0 : index
    %c0_65 = arith.constant 0 : index
    %65 = vector.load %arg8[%c0_64, %c0_65] : memref<128x128xf32, #tpu.memory_space<vmem>>, vector<128x128xf32>
    %c1_66 = arith.constant 1 : index
    %c2_67 = arith.constant 2 : index
    %c0_68 = arith.constant 0 : index
    %c0_69 = arith.constant 0 : index
    %66 = vector.load %arg5[%c1_66, %c2_67, %c0_68, %c0_69] : memref<3x3x4x128xbf16, #tpu.memory_space<vmem>>, vector<1x1x4x128xbf16>
    %67 = vector.shape_cast %66 : vector<1x1x4x128xbf16> to vector<4x128xbf16>
    %cst_70 = arith.constant dense<0.000000e+00> : vector<128x128xf32>
    %68 = tpu.matmul %64, %67, %cst_70 {dimension_numbers = #tpu.dot_dimension_numbers<[1], [0], [0], [1], [0, 0, 1, 1], [], []>} : vector<128x4xbf16>, vector<4x128xbf16>, vector<128x128xf32> -> vector<128x128xf32>
    %69 = arith.addf %65, %68 : vector<128x128xf32>
    %c0_71 = arith.constant 0 : index
    %c0_72 = arith.constant 0 : index
    %70 = vector.load %arg8[%c0_71, %c0_72] : memref<128x128xf32, #tpu.memory_space<vmem>>, vector<128x128xf32>
    tpu.vector_store %arg8[%c0_71, %c0_72], %69 {strides = array<i32>} : memref<128x128xf32, #tpu.memory_space<vmem>>, vector<128x128xf32>,
    %c4_i32 = arith.constant 4 : i32
    %71 = arith.addi %4, %c4_i32 : i32
    %c0_73 = arith.constant 0 : index
    %72 = arith.index_cast %71 : i32 to index
    %c0_74 = arith.constant 0 : index
    %c0_75 = arith.constant 0 : index
    %73 = vector.load %arg4[%c0_73, %72, %c0_74, %c0_75] : memref<1x20x20x4xbf16, #tpu.memory_space<vmem>>, vector<1x8x16x4xbf16>
    %74 = vector.shape_cast %73 : vector<1x8x16x4xbf16> to vector<8x16x4xbf16>
    %75 = vector.shape_cast %74 : vector<8x16x4xbf16> to vector<128x4xbf16>
    %c0_76 = arith.constant 0 : index
    %c0_77 = arith.constant 0 : index
    %76 = vector.load %arg8[%c0_76, %c0_77] : memref<128x128xf32, #tpu.memory_space<vmem>>, vector<128x128xf32>
    %c2_78 = arith.constant 2 : index
    %c0_79 = arith.constant 0 : index
    %c0_80 = arith.constant 0 : index
    %c0_81 = arith.constant 0 : index
    %77 = vector.load %arg5[%c2_78, %c0_79, %c0_80, %c0_81] : memref<3x3x4x128xbf16, #tpu.memory_space<vmem>>, vector<1x1x4x128xbf16>
    %78 = vector.shape_cast %77 : vector<1x1x4x128xbf16> to vector<4x128xbf16>
    %cst_82 = arith.constant dense<0.000000e+00> : vector<128x128xf32>
    %79 = tpu.matmul %75, %78, %cst_82 {dimension_numbers = #tpu.dot_dimension_numbers<[1], [0], [0], [1], [0, 0, 1, 1], [], []>} : vector<128x4xbf16>, vector<4x128xbf16>, vector<128x128xf32> -> vector<128x128xf32>
    %80 = arith.addf %76, %79 : vector<128x128xf32>
    %c0_83 = arith.constant 0 : index
    %c0_84 = arith.constant 0 : index
    %81 = vector.load %arg8[%c0_83, %c0_84] : memref<128x128xf32, #tpu.memory_space<vmem>>, vector<128x128xf32>
    tpu.vector_store %arg8[%c0_83, %c0_84], %80 {strides = array<i32>} : memref<128x128xf32, #tpu.memory_space<vmem>>, vector<128x128xf32>,
    %c4_i32_85 = arith.constant 4 : i32
    %82 = arith.addi %4, %c4_i32_85 : i32
    %c0_86 = arith.constant 0 : index
    %83 = arith.index_cast %82 : i32 to index
    %c2_87 = arith.constant 2 : index
    %c0_88 = arith.constant 0 : index
    %84 = vector.load %arg4[%c0_86, %83, %c2_87, %c0_88] : memref<1x20x20x4xbf16, #tpu.memory_space<vmem>>, vector<1x8x16x4xbf16>
    %85 = vector.shape_cast %84 : vector<1x8x16x4xbf16> to vector<8x16x4xbf16>
    %86 = vector.shape_cast %85 : vector<8x16x4xbf16> to vector<128x4xbf16>
    %c0_89 = arith.constant 0 : index
    %c0_90 = arith.constant 0 : index
    %87 = vector.load %arg8[%c0_89, %c0_90] : memref<128x128xf32, #tpu.memory_space<vmem>>, vector<128x128xf32>
    %c2_91 = arith.constant 2 : index
    %c1_92 = arith.constant 1 : index
    %c0_93 = arith.constant 0 : index
    %c0_94 = arith.constant 0 : index
    %88 = vector.load %arg5[%c2_91, %c1_92, %c0_93, %c0_94] : memref<3x3x4x128xbf16, #tpu.memory_space<vmem>>, vector<1x1x4x128xbf16>
    %89 = vector.shape_cast %88 : vector<1x1x4x128xbf16> to vector<4x128xbf16>
    %cst_95 = arith.constant dense<0.000000e+00> : vector<128x128xf32>
    %90 = tpu.matmul %86, %89, %cst_95 {dimension_numbers = #tpu.dot_dimension_numbers<[1], [0], [0], [1], [0, 0, 1, 1], [], []>} : vector<128x4xbf16>, vector<4x128xbf16>, vector<128x128xf32> -> vector<128x128xf32>
    %91 = arith.addf %87, %90 : vector<128x128xf32>
    %c0_96 = arith.constant 0 : index
    %c0_97 = arith.constant 0 : index
    %92 = vector.load %arg8[%c0_96, %c0_97] : memref<128x128xf32, #tpu.memory_space<vmem>>, vector<128x128xf32>
    tpu.vector_store %arg8[%c0_96, %c0_97], %91 {strides = array<i32>} : memref<128x128xf32, #tpu.memory_space<vmem>>, vector<128x128xf32>,
    %c4_i32_98 = arith.constant 4 : i32
    %93 = arith.addi %4, %c4_i32_98 : i32
    %c0_99 = arith.constant 0 : index
    %94 = arith.index_cast %93 : i32 to index
    %c4_100 = arith.constant 4 : index
    %c0_101 = arith.constant 0 : index
    %95 = vector.load %arg4[%c0_99, %94, %c4_100, %c0_101] : memref<1x20x20x4xbf16, #tpu.memory_space<vmem>>, vector<1x8x16x4xbf16>
    %96 = vector.shape_cast %95 : vector<1x8x16x4xbf16> to vector<8x16x4xbf16>
    %97 = vector.shape_cast %96 : vector<8x16x4xbf16> to vector<128x4xbf16>
    %c0_102 = arith.constant 0 : index
    %c0_103 = arith.constant 0 : index
    %98 = vector.load %arg8[%c0_102, %c0_103] : memref<128x128xf32, #tpu.memory_space<vmem>>, vector<128x128xf32>
    %c2_104 = arith.constant 2 : index
    %c2_105 = arith.constant 2 : index
    %c0_106 = arith.constant 0 : index
    %c0_107 = arith.constant 0 : index
    %99 = vector.load %arg5[%c2_104, %c2_105, %c0_106, %c0_107] : memref<3x3x4x128xbf16, #tpu.memory_space<vmem>>, vector<1x1x4x128xbf16>
    %100 = vector.shape_cast %99 : vector<1x1x4x128xbf16> to vector<4x128xbf16>
    %cst_108 = arith.constant dense<0.000000e+00> : vector<128x128xf32>
    %101 = tpu.matmul %97, %100, %cst_108 {dimension_numbers = #tpu.dot_dimension_numbers<[1], [0], [0], [1], [0, 0, 1, 1], [], []>} : vector<128x4xbf16>, vector<4x128xbf16>, vector<128x128xf32> -> vector<128x128xf32>
    %102 = arith.addf %98, %101 : vector<128x128xf32>
    %c0_109 = arith.constant 0 : index
    %c0_110 = arith.constant 0 : index
    %103 = vector.load %arg8[%c0_109, %c0_110] : memref<128x128xf32, #tpu.memory_space<vmem>>, vector<128x128xf32>
    tpu.vector_store %arg8[%c0_109, %c0_110], %102 {strides = array<i32>} : memref<128x128xf32, #tpu.memory_space<vmem>>, vector<128x128xf32>,
    %c0_i32_111 = arith.constant 0 : i32
    %104 = arith.cmpi eq, %arg3, %c0_i32_111 : i32
    %105 = arith.extui %104 : i1 to i32
    %c0_i32_112 = arith.constant 0 : i32
    %106 = arith.cmpi ne, %105, %c0_i32_112 : i32
    scf.if %106 {
      %c0_113 = arith.constant 0 : index
      %c0_114 = arith.constant 0 : index
      %107 = vector.load %arg8[%c0_113, %c0_114] : memref<128x128xf32, #tpu.memory_space<vmem>>, vector<128x128xf32>
      %c0_115 = arith.constant 0 : index
      %c0_116 = arith.constant 0 : index
      %108 = vector.load %arg6[%c0_115, %c0_116] : memref<1x128xf32, #tpu.memory_space<vmem>>, vector<1x128xf32>
      %109 = vector.broadcast %108 : vector<1x128xf32> to vector<128x128xf32>
      %110 = arith.addf %107, %109 : vector<128x128xf32>
      %cst_117 = arith.constant 0.000000e+00 : f32
      %111 = vector.broadcast %cst_117 : f32 to vector<128x128xf32>
      %112 = arith.maximumf %110, %111 : vector<128x128xf32>
      %113 = vector.shape_cast %112 : vector<128x128xf32> to vector<1x8x16x128xf32>
      %c0_118 = arith.constant 0 : index
      %c0_119 = arith.constant 0 : index
      %c0_120 = arith.constant 0 : index
      %c0_121 = arith.constant 0 : index
      %114 = vector.load %arg7[%c0_118, %c0_119, %c0_120, %c0_121] : memref<1x8x16x128xf32, #tpu.memory_space<vmem>>, vector<1x8x16x128xf32>
      tpu.vector_store %arg7[%c0_118, %c0_119, %c0_120, %c0_121], %113 {strides = array<i32>} : memref<1x8x16x128xf32, #tpu.memory_space<vmem>>, vector<1x8x16x128xf32>,
    } else {
    }
    return
  }
  func.func @transform_0(%arg0: i32, %arg1: i32, %arg2: i32, %arg3: i32) -> (i32, i32, i32, i32) {
    %c0_i32 = arith.constant 0 : i32
    %c0_i32_0 = arith.constant 0 : i32
    %c0_i32_1 = arith.constant 0 : i32
    return %arg0, %c0_i32, %c0_i32_0, %arg3 : i32, i32, i32, i32
  }
  func.func @transform_1(%arg0: i32, %arg1: i32, %arg2: i32, %arg3: i32) -> (i32, i32, i32, i32) {
    %c0_i32 = arith.constant 0 : i32
    %c0_i32_0 = arith.constant 0 : i32
    %c0_i32_1 = arith.constant 0 : i32
    return %c0_i32, %c0_i32_0, %arg3, %arg2 : i32, i32, i32, i32
  }
  func.func @transform_2(%arg0: i32, %arg1: i32, %arg2: i32, %arg3: i32) -> (i32, i32) {
    %c0_i32 = arith.constant 0 : i32
    %c0_i32_0 = arith.constant 0 : i32
    return %c0_i32, %arg2 : i32, i32
  }
  func.func @transform_3(%arg0: i32, %arg1: i32, %arg2: i32, %arg3: i32) -> (i32, i32, i32, i32) {
    %c0_i32 = arith.constant 0 : i32
    %c0_i32_0 = arith.constant 0 : i32
    return %arg0, %arg1, %c0_i32, %arg2 : i32, i32, i32, i32
  }
}

</mosaic_0001>

<bundles_post_ra>
// kernel: tpu_custom_call.1
= control target key start
LH: loop header
LB: loop body
LE: loop exit
PB: predicated region body
PF: predicated region fallthrough
CT: control target
= control target key end

     0   :  { %8 = vsyncpa [#allocation4], 0  ;;  %s4673_s0 = inlined_call_operand.vmem [shape: bf16[2,20,20,4], index: 0, kind: input, shape index: {}]   ;;  %s4674_s1 = inlined_call_operand.vmem [shape: bf16[3,3,4,128], index: 1, kind: input, shape index: {}]   ;;  %s4675_s2 = inlined_call_operand.vmem [shape: f32[1,128], index: 2, kind: input, shape index: {}]   ;;  %s4676_s3 = inlined_call_operand.hbm [shape: f32[2,16,16,128], index: 3, kind: output, shape index: {}]  }
   0x1   :  { %10 = vsyncpa [#allocation4 + $0x1], 0  ;;  %s3970_s12 = smov 0   ;;  %s3972_s13 = smov 0  }
   0x2   :  { %s3974_s14 = smov 0   ;;  %s3976_s15 = smov 0  }
   0x3   :  { %s3978_s16 = smov 0   ;;  %s3980_s17 = smov 0  }
   0x4   :  { %s3982_s18 = smov 0   ;;  %s3984_s19 = smov 0  }
   0x5 LB: > { %s3016_s20 = sadd.s32 4294967295, %s3945_s19   ;;  %s3017_s21 = sadd.s32 4294967294, %s3945_s19   ;;  %s3945_s19 = sphi %s3984_s19, %s16_s19   ;;  %s3941_s18 = sphi %s3982_s18, %s4689_s18   ;;  %s3937_s17 = sphi %s3980_s17, %s4688_s17   ;;  %s3933_s16 = sphi %s3978_s16, %s4687_s16   ;;  %s3929_s15 = sphi %s3976_s15, %s4686_s15   ;;  %s3925_s14 = sphi %s3974_s14, %s4685_s14   ;;  %s3921_s13 = sphi %s3972_s13, %s4684_s13   ;;  %s3917_s12 = sphi %s3970_s12, %s4683_s12  }
   0x6   : > { %s38_s22 = sadd.s32 1, %s3937_s17  ;;  %s42_s23 = sadd.s32 1, %s3941_s18 }
   0x7   : > { %p40_p0 = scmp.ge.s32.totalorder %s38_s22, 2  ;;  %p145_p1 = scmp.ne.s32.totalorder %s3925_s14, %s3921_s13 }
   0x8   : > { %p146_p2 = scmp.eq.s32.totalorder %s3016_s20, 3  ;;  %p151_p5 = scmp.ne.s32.totalorder %s3921_s13, %s3917_s12 }
   0x9   : > { %s4691_s22 = smov (%p40_p0, %s38_s22), 0  ;;  %s4693_s23 = smov (!%p40_p0, %s42_s23), %s3941_s18 }
   0xa   : > { %s129_s24 = ssub.s32 %s3937_s17, %s4691_s22  ;;  %p4021_p3 = por %p146_p2, %p145_p1 }
   0xb   : > { %p44_p4 = scmp.ge.s32.totalorder %s4693_s23, 2  ;;  %p152_p6 = scmp.eq.s32.totalorder %s3017_s21, 3 }
   0xc   : > { %p3022_p7 = scmp.ge.s32.totalorder %s3945_s19, 1  ;;  %p197_p9 = scmp.lt.s32.totalorder %s3945_s19, 5 }
   0xd   : > { %s4695_s23 = smov (%p44_p4, %s4693_s23), 0  ;;  %p4030_p8 = por %p152_p6, %p151_p5 }
   0xe   : > { %s128_s27 = ssub.s32 %s3941_s18, %s4695_s23  ;;  %s135_s28 = sadd.s32 1, %s3925_s14 }
   0xf   : > { %s130_s29 = sor.u32 %s129_s24, %s128_s27  ;;  %p198_p10 = pnand %p3022_p7, %p197_p9 }
  0x10   : > { %p133_p11 = scmp.eq.s32.totalorder %s130_s29, 0  ;;  %v310_v0 = vld [vmem:[%s4674_s1] sm:$0x3] (!%p198_p10)  ;;  %vm376_vm0 = vcmask (!%p198_p10), 1041408   ;;  %p234_p12 = scmp.lt.s32.totalorder (!%p198_p10), %s3933_s16, 1  ;;  %vm557_vm1 = vcmask (!%p198_p10), 1042432  }
  0x11   : > { %201 = sbr.rel (%p198_p10) target bundleno = 413 (0x19d), region = 32  ;;  %3743 = vmatprep.subr.msk.bf16.mxu1 (!%p198_p10), %vm376_vm0, %v310_v0  ;;  %v378_v1 = vsel (!%p198_p10), %vm376_vm0, %v310_v0, 0  ;;  %v4050_v2 = vld [vmem:[%s4674_s1 + $0x8] sm:$0x3] (!%p198_p10)  ;;  %v3052_v3 = vld [vmem:[%s4674_s1 + $0x2] sm:$0x3] (!%p198_p10) }
  0x12   : > { %s4039_s30 = scalar_select %p133_p11, %s3925_s14, %s135_s28  }
  0x13   : > { %3452 = vmatpush3.bf16.msra.mxu1 (!%p198_p10), %v378_v1  ;;  %3747 = vmatprep.subr.msk.bf16.mxu0 (!%p198_p10), %vm376_vm0, %v4050_v2  ;;  %v4060_v4 = vsel (!%p198_p10), %vm376_vm0, %v4050_v2, 0  ;;  %v3210_v5 = vld [vmem:[%s4674_s1 + $0xa] sm:$0x3] (!%p198_p10)  ;;  %s3368_s21 = smul.u32 (!%p198_p10), 96, %s3929_s15  ;;  %vm558_vm2 = vcmask (!%p198_p10), 1046532   ;;  %vm351_vm3 = vcmask (!%p198_p10), 31744  }
  0x14   : > { %3524 = vmatpush3.bf16.msra.mxu0 (!%p198_p10), %v4060_v4  ;;  %3744 = vmatprep.subr.msk.bf16.mxu1 (!%p198_p10), %vm376_vm0, %v3052_v3  ;;  %vm4074_vm4 = vmor (!%p198_p10), %vm557_vm1, %vm558_vm2  ;;  %v3077_v8 = vld [vmem:[%s4674_s1 + $0x4] sm:$0x3] (!%p198_p10)  ;;  %vm863_vm5 = vcmask (!%p198_p10), 1045508   ;;  %v683_v10 = vsel (!%p198_p10), %vm376_vm0, %v3052_v3, 0  ;;  %v1826_v22 = vsel (!%p198_p10), %vm376_vm0, %v3210_v5, 0  ;;  %s231_s27 = sand.u32 (!%p198_p10), 1, %s3921_s13  }
  0x15   : > { %3749 = vmatprep.subr.msk.bf16.mxu0 (!%p198_p10), %vm376_vm0, %v3210_v5  ;;  %v3245_v28 = vld [vmem:[%s4674_s1 + $0xc] sm:$0x3] (!%p198_p10)  ;;  %vm4124_vm6 = vmor (!%p198_p10), %vm376_vm0, %vm863_vm5  ;;  %v4135_v56 = vsel (!%p198_p10), %vm376_vm0, %v3077_v8, 0  ;;  %s3369_s6 = sshll.u32 (!%p198_p10), %s3929_s15, 4  ;;  %s3364_s7 = sshll.u32 (!%p198_p10), %s3933_s16, 5 }
  0x16   : > { %v4120_v50 = vsel (!%p198_p10), %vm376_vm0, %v3245_v28, 0  ;;  %s2884_s8 = sadd.s32 (!%p198_p10), %s3369_s6, %s3364_s7  ;;  %s4621_s20 = scalar_lea.sflag (!%p198_p10), [#allocation4], %s231_s27 }
  0x17   : > { %s3365_s15 = sshll.u32 (!%p198_p10), %s2884_s8, 7 }
  0x18   : > { %s235_s10 = scalar_select %p234_p12, %s3933_s16, 1 }
  0x19   : > { %s4612_s11 = scalar_lea.hbm %s4676_s3, %s3365_s15 }
  0x1a   : > { %s3753_s24 = smul.u32 240, %s235_s10 }
  0x1c   : > { %s241_s29 = scalar_lea.vmem %s4673_s0, %s3753_s24  ;;  %s3947_s24 = smov [#allocation3]  }
  0x1d   : > { %s4072_s4 = scalar_lea.vmem %s241_s29, %s3368_s21  ;;  %s3855_s28 = sshll.u32 %s3947_s24, 4  ;;  %s3856_s28 = int_to_ptr.vmem [resolvable:$false] %s3855_s28 }
  0x1e   : > { %v3827_v7 = vld [vmem:[%s4072_s4] sm:$0xff]   ;;  %v3828_v9 = vld [vmem:[%s4072_s4 + $0xc] sm:$0xff]   ;;  %v3129_v11 = vld [vmem:[%s4072_s4 + $0x18] sm:$0xe]  ;;  %s3857_s29 = scalar_lea.vmem %s3856_s28, 4096 }
  0x1f   : > { %3453 = vmatprep.mubr.msk.bf16.mxu1 %vm351_vm3, %v3827_v7  ;;  %v3130_v12 = vld [vmem:[%s4072_s4 + $0x1c] sm:$0xf]  ;;  %v3131_v13 = vld [vmem:[%s4072_s4 + $0x20] sm:$0x1]  ;;  %v3153_v14 = vrot.slane %v3129_v11, 9  ;;  %v3830_v27 = vld [vmem:[%s4072_s4 + $0x24] sm:$0xff]  }
  0x20   : > { %3454 = vmatmul.mubr.msk.bf16.vlgmr.msra.gmra.mrb[0].mxu1 %vm351_vm3, %v3828_v9  ;;  %v1403_v15 = vrot.slane %v3130_v12, 5  ;;  %v1406_v16 = vrot.slane %v3131_v13, 5  ;;  %v3132_v17 = vld [vmem:[%s4072_s4 + $0x24] sm:$0xe]  ;;  %v3829_v18 = vld [vmem:[%s4072_s4 + $0x18] sm:$0xff]   ;;  %v3831_v34 = vld [vmem:[%s4072_s4 + $0x30] sm:$0xff]  }
  0x21   : > { %3470 = vmatpush3.bf16.msra.mxu1 %v683_v10  ;;  %v3133_v19 = vld [vmem:[%s4072_s4 + $0x28] sm:$0xf]  ;;  %v3134_v20 = vld [vmem:[%s4072_s4 + $0x2c] sm:$0x1]  ;;  %v3154_v21 = vrot.slane %v3132_v17, 9  ;;  %3457 = vmatprep.mubr.msk.bf16.mxu1 %vm351_vm3, %v3829_v18  ;;  %v3832_v0 = vld [vmem:[%s4072_s4 + $0x3c] sm:$0xff]  }
  0x22   : > { %v1404_v23 = vsel %vm4074_vm4, %v3153_v14, %v1403_v15  ;;  %v1405_v24 = vrot.slane %v1403_v15, 4  ;;  %v1410_v25 = vrot.slane %v3133_v19, 5  ;;  %v1413_v26 = vrot.slane %v3134_v20, 5  ;;  %3745 = vmatprep.subr.msk.bf16.mxu1 %vm376_vm0, %v3077_v8  ;;  %v3135_v32 = vld [vmem:[%s4072_s4 + $0x30] sm:$0xe]  ;;  %v3833_v12 = vld [vmem:[%s4072_s4 + $0x48] sm:$0xff]  }
  0x23   : > { %v3136_v33 = vld [vmem:[%s4072_s4 + $0x34] sm:$0xf]  ;;  %v3137_v36 = vld [vmem:[%s4072_s4 + $0x38] sm:$0x1]  ;;  %v3155_v37 = vrot.slane %v3135_v32, 9 }
  0x24   : > { %v1407_v29 = vsel %vm4074_vm4, %v1405_v24, %v1406_v16  ;;  %v1411_v30 = vsel %vm4074_vm4, %v3154_v21, %v1410_v25  ;;  %v1412_v31 = vrot.slane %v1410_v25, 4  ;;  %v1417_v38 = vrot.slane %v3136_v33, 5  ;;  %v3138_v39 = vld [vmem:[%s4072_s4 + $0x3c] sm:$0xe]  ;;  %v3139_v42 = vld [vmem:[%s4072_s4 + $0x40] sm:$0xf] }
  0x25   : > { %v3162_v35 = vcombine.low %v1404_v23, %v1407_v29  ;;  %v1420_v41 = vrot.slane %v3137_v36, 5  ;;  %v3140_v43 = vld [vmem:[%s4072_s4 + $0x44] sm:$0x1]  ;;  %v3156_v44 = vrot.slane %v3138_v39, 9  ;;  %v1424_v48 = vrot.slane %v3139_v42, 5  ;;  %v3834_v33 = vld [vmem:[%s4072_s4 + $0x54] sm:$0xff]  }
  0x26   : > { %v1414_v40 = vsel %vm4074_vm4, %v1412_v31, %v1413_v26  ;;  %v1418_v46 = vsel %vm4074_vm4, %v3155_v37, %v1417_v38  ;;  %v1419_v47 = vrot.slane %v1417_v38, 4  ;;  %v1427_v49 = vrot.slane %v3140_v43, 5  ;;  %v3178_v54 = vld [vmem:[%s4072_s4 + $0x18] sm:$0xc]  ;;  %v3179_v55 = vld [vmem:[%s4072_s4 + $0x1c] sm:$0xf] }
  0x27   : > { %3525 = vmatprep.mubr.msk.bf16.mxu0 %vm351_vm3, %v3162_v35  ;;  %v3163_v45 = vcombine.low %v1411_v30, %v1414_v40  ;;  %v1426_v53 = vrot.slane %v1424_v48, 4  ;;  %v1425_v58 = vsel %vm4074_vm4, %v3156_v44, %v1424_v48  ;;  %v3180_v59 = vld [vmem:[%s4072_s4 + $0x20] sm:$0x3]  ;;  %v3202_v60 = vrot.slane %v3178_v54, 10  ;;  %v3181_v62 = vld [vmem:[%s4072_s4 + $0x24] sm:$0xc] }
  0x28   : > { %3458 = vmatmul.mubr.msk.bf16.gmra.mrb[4].mxu1 %vm351_vm3, %v3830_v27  ;;  %v1421_v52 = vsel %vm4074_vm4, %v1419_v47, %v1420_v41  ;;  %v1705_v61 = vrot.slane %v3179_v55, 6  ;;  %v1708_v1 = vrot.slane %v3180_v59, 6  ;;  %v3182_v3 = vld [vmem:[%s4072_s4 + $0x28] sm:$0xf]  ;;  %v3183_v5 = vld [vmem:[%s4072_s4 + $0x2c] sm:$0x3] }
  0x29   : > { %3526 = vmatmul.mubr.msk.bf16.vlgmr.msra.gmra.mrb[0].mxu0 %vm351_vm3, %v3163_v45  ;;  %3461 = vmatprep.mubr.msk.bf16.mxu1 %vm351_vm3, %v3831_v34  ;;  %v3164_v57 = vcombine.low %v1418_v46, %v1421_v52  ;;  %v1428_v63 = vsel %vm4074_vm4, %v1426_v53, %v1427_v49  ;;  %v1712_v9 = vrot.slane %v3182_v3, 6  ;;  %v3203_v11 = vrot.slane %v3181_v62, 10  ;;  %v3184_v16 = vld [vmem:[%s4072_s4 + $0x30] sm:$0xc]  ;;  %v3185_v17 = vld [vmem:[%s4072_s4 + $0x34] sm:$0xf] }
  0x2a   : > { %3542 = vmatpush3.bf16.msra.mxu0 %v1826_v22  ;;  %v1706_v7 = vsel %vm4124_vm6, %v3202_v60, %v1705_v61  ;;  %v1707_v8 = vrot.slane %v1705_v61, 4  ;;  %v3165_v10 = vcombine.low %v1425_v58, %v1428_v63  ;;  %v1715_v15 = vrot.slane %v3183_v5, 6  ;;  %v3186_v19 = vld [vmem:[%s4072_s4 + $0x38] sm:$0x3]  ;;  %v3187_v22 = vld [vmem:[%s4072_s4 + $0x3c] sm:$0xc] }
  0x2b   : > { %3750 = vmatprep.subr.msk.bf16.mxu0 %vm376_vm0, %v3245_v28  ;;  %3529 = vmatprep.mubr.msk.bf16.mxu0 %vm351_vm3, %v3164_v57  ;;  %v1714_v14 = vrot.slane %v1712_v9, 4  ;;  %v3204_v20 = vrot.slane %v3184_v16, 10  ;;  %v1719_v21 = vrot.slane %v3185_v17, 6  ;;  %v1722_v23 = vrot.slane %v3186_v19, 6  ;;  %v3188_v24 = vld [vmem:[%s4072_s4 + $0x40] sm:$0xf] }
  0x2c   : > { %v1709_v13 = vsel %vm4124_vm6, %v1707_v8, %v1708_v1  ;;  %v3189_v25 = vld [vmem:[%s4072_s4 + $0x44] sm:$0x3]  ;;  %v3205_v26 = vrot.slane %v3187_v22, 10  ;;  %v1713_v27 = vsel %vm4124_vm6, %v3203_v11, %v1712_v9  ;;  %v1726_v29 = vrot.slane %v3188_v24, 6  ;;  %v509_v30 = vld [vmem:[%s4072_s4] sm:$0xe] }
  0x2d   : > { %v3211_v18 = vcombine.low %v1706_v7, %v1709_v13  ;;  %v1721_v28 = vrot.slane %v1719_v21, 4  ;;  %v510_v31 = vld [vmem:[%s4072_s4 + $0x4] sm:$0xf]  ;;  %v1716_v32 = vsel %vm4124_vm6, %v1714_v14, %v1715_v15  ;;  %v1729_v34 = vrot.slane %v3189_v25, 6  ;;  %v511_v35 = vld [vmem:[%s4072_s4 + $0x8] sm:$0x1] }
  0x2e   : > { %v3044_v36 = vrot.slane %v509_v30, 9  ;;  %v562_v37 = vrot.slane %v510_v31, 5  ;;  %v1720_v38 = vsel %vm4124_vm6, %v3204_v20, %v1719_v21  ;;  %v1728_v40 = vrot.slane %v1726_v29, 4  ;;  %v512_v42 = vld [vmem:[%s4072_s4 + $0xc] sm:$0xe] }
  0x2f   : > { %v1723_v39 = vsel %vm4124_vm6, %v1721_v28, %v1722_v23  ;;  %v565_v41 = vrot.slane %v511_v35, 5  ;;  %v513_v43 = vld [vmem:[%s4072_s4 + $0x10] sm:$0xf]  ;;  %v514_v46 = vld [vmem:[%s4072_s4 + $0x14] sm:$0x1]  ;;  %v3045_v47 = vrot.slane %v512_v42, 9  ;;  %v3212_v49 = vcombine.low %v1713_v27, %v1716_v32 }
  0x30   : > { %3462 = vmatmul.mubr.msk.bf16.gmra.mrb[8].mxu1 %vm351_vm3, %v3832_v0  ;;  %v563_v44 = vsel %vm4074_vm4, %v3044_v36, %v562_v37  ;;  %v564_v45 = vrot.slane %v562_v37, 4  ;;  %v3190_v48 = vld [vmem:[%s4072_s4 + $0x48] sm:$0xc]  ;;  %v4183_v52 = vsel %vm4124_vm6, %v3205_v26, %v1726_v29  ;;  %v569_v53 = vrot.slane %v513_v43, 5  ;;  %v3191_v55 = vld [vmem:[%s4072_s4 + $0x4c] sm:$0xf] }
  0x31   : > { %3530 = vmatmul.mubr.msk.bf16.gmra.mrb[4].mxu0 %vm351_vm3, %v3165_v10  ;;  %3465 = vmatprep.mubr.msk.bf16.mxu1 %vm351_vm3, %v3833_v12  ;;  %v572_v54 = vrot.slane %v514_v46, 5  ;;  %v3192_v57 = vld [vmem:[%s4072_s4 + $0x50] sm:$0x3]  ;;  %v3213_v58 = vcombine.low %v1720_v38, %v1723_v39  ;;  %v3206_v60 = vrot.slane %v3190_v48, 10  ;;  %v1733_v61 = vrot.slane %v3191_v55, 6 }
  0x32   : > { %3543 = vmatprep.mubr.msk.bf16.mxu0 %vm351_vm3, %v3211_v18  ;;  %v566_v59 = vsel %vm4074_vm4, %v564_v45, %v565_v41  ;;  %v3193_v62 = vld [vmem:[%s4072_s4 + $0x54] sm:$0xc]  ;;  %v3194_v63 = vld [vmem:[%s4072_s4 + $0x58] sm:$0xf]  ;;  %v1730_v0 = vsel %vm4124_vm6, %v1728_v40, %v1729_v34  ;;  %v571_v3 = vrot.slane %v569_v53, 4  ;;  %v1736_v5 = vrot.slane %v3192_v57, 6 }
  0x33   : > { %v3053_v1 = vcombine.low %v563_v44, %v566_v59  ;;  %v3195_v7 = vld [vmem:[%s4072_s4 + $0x5c] sm:$0x3]  ;;  %v515_v8 = vld [vmem:[%s4072_s4 + $0x18] sm:$0xe]  ;;  %v1735_v9 = vrot.slane %v1733_v61, 4  ;;  %v1740_v10 = vrot.slane %v3194_v63, 6  ;;  %v570_v13 = vsel %vm4074_vm4, %v3045_v47, %v569_v53 }
  0x34   : > { %v516_v11 = vld [vmem:[%s4072_s4 + $0x1c] sm:$0xf]  ;;  %v4200_v12 = vld [vmem:[%s4674_s1 + $0xe] sm:$0x3]  ;;  %v573_v14 = vsel %vm4074_vm4, %v571_v3, %v572_v54  ;;  %v517_v15 = vld [vmem:[%s4072_s4 + $0x20] sm:$0x1]  ;;  %v3214_v18 = vcombine.low %v4183_v52, %v1730_v0  ;;  %v1734_v19 = vsel %vm4124_vm6, %v3206_v60, %v1733_v61 }
  0x35   : > { %v3046_v16 = vrot.slane %v515_v8, 9  ;;  %v576_v17 = vrot.slane %v516_v11, 5  ;;  %v3207_v20 = vrot.slane %v3193_v62, 10  ;;  %v1743_v21 = vrot.slane %v3195_v7, 6  ;;  %v518_v22 = vld [vmem:[%s4072_s4 + $0x24] sm:$0xe] }
  0x36   : > { %v519_v23 = vld [vmem:[%s4072_s4 + $0x28] sm:$0xf]  ;;  %v1737_v24 = vsel %vm4124_vm6, %v1735_v9, %v1736_v5  ;;  %v579_v26 = vrot.slane %v517_v15, 5  ;;  %v520_v27 = vld [vmem:[%s4072_s4 + $0x2c] sm:$0x1]  ;;  %v3054_v29 = vcombine.low %v570_v13, %v573_v14  ;;  %v1742_v30 = vrot.slane %v1740_v10, 4 }
  0x37   : > { %v577_v25 = vsel %vm4074_vm4, %v3046_v16, %v576_v17  ;;  %v3196_v28 = vld [vmem:[%s4072_s4 + $0x60] sm:$0xc]  ;;  %v3047_v31 = vrot.slane %v518_v22, 9  ;;  %v583_v32 = vrot.slane %v519_v23, 5  ;;  %v586_v35 = vrot.slane %v520_v27, 5 }
  0x38   : > { %3466 = vmatmul.mubr.msk.bf16.gmra.mrb[12].mxu1 %vm351_vm3, %v3834_v33  ;;  %v3197_v33 = vld [vmem:[%s4072_s4 + $0x64] sm:$0xf]  ;;  %v3198_v36 = vld [vmem:[%s4072_s4 + $0x68] sm:$0x3]  ;;  %v3208_v37 = vrot.slane %v3196_v28, 10  ;;  %v3215_v39 = vcombine.low %v1734_v19, %v1737_v24  ;;  %v1741_v52 = vsel %vm4124_vm6, %v3207_v20, %v1740_v10  ;;  %v1744_v57 = vsel %vm4124_vm6, %v1742_v30, %v1743_v21 }
  0x39   : > { %3544 = vmatmul.mubr.msk.bf16.vlgmr.msra.gmra.mrb[0].mxu0 %vm351_vm3, %v3212_v49  ;;  %3471 = vmatprep.mubr.msk.bf16.mxu1 %vm351_vm3, %v3053_v1  ;;  %v1747_v38 = vrot.slane %v3197_v33, 6  ;;  %v585_v41 = vrot.slane %v583_v32, 4  ;;  %v1750_v42 = vrot.slane %v3198_v36, 6  ;;  %v3199_v43 = vld [vmem:[%s4072_s4 + $0x6c] sm:$0xc]  ;;  %v3216_v14 = vcombine.low %v1741_v52, %v1744_v57 }
  0x3a   : > { %3560 = vmatpush3.bf16.msra.mxu0 %v4120_v50  ;;  %3547 = vmatprep.mubr.msk.bf16.mxu0 %vm351_vm3, %v3213_v58  ;;  %v578_v50 = vrot.slane %v576_v17, 4  ;;  %v3200_v44 = vld [vmem:[%s4072_s4 + $0x70] sm:$0xf]  ;;  %v4233_v45 = vld [vmem:[%s4674_s1 + $0x6] sm:$0x3]  ;;  %v584_v58 = vsel %vm4074_vm4, %v3047_v31, %v583_v32  ;;  %v3209_v62 = vrot.slane %v3199_v43, 10 }
  0x3b   : > { %3751 = vmatprep.subr.msk.bf16.mxu0 %vm376_vm0, %v4200_v12  ;;  %v1749_v46 = vrot.slane %v1747_v38, 4  ;;  %v3201_v47 = vld [vmem:[%s4072_s4 + $0x74] sm:$0x3]  ;;  %v1754_v48 = vrot.slane %v3200_v44, 6  ;;  %v521_v49 = vld [vmem:[%s4072_s4 + $0x30] sm:$0xe]  ;;  %v587_v59 = vsel %vm4074_vm4, %v585_v41, %v586_v35  ;;  %v1748_v3 = vsel %vm4124_vm6, %v3208_v37, %v1747_v38 }
  0x3c   : > { %v580_v34 = vsel %vm4074_vm4, %v578_v50, %v579_v26  ;;  %v522_v53 = vld [vmem:[%s4072_s4 + $0x34] sm:$0xf]  ;;  %v523_v54 = vld [vmem:[%s4072_s4 + $0x38] sm:$0x1]  ;;  %v3048_v55 = vrot.slane %v521_v49, 9  ;;  %v1757_v63 = vrot.slane %v3201_v47, 6  ;;  %v3056_v9 = vcombine.low %v584_v58, %v587_v59 }
  0x3d   : > { %v3055_v40 = vcombine.low %v577_v25, %v580_v34  ;;  %v524_v60 = vld [vmem:[%s4072_s4 + $0x3c] sm:$0xe]  ;;  %v525_v61 = vld [vmem:[%s4072_s4 + $0x40] sm:$0xf]  ;;  %v590_v0 = vrot.slane %v522_v53, 5  ;;  %v1751_v5 = vsel %vm4124_vm6, %v1749_v46, %v1750_v42  ;;  %v1756_v7 = vrot.slane %v1754_v48, 4 }
  0x3e   : > { %v526_v1 = vld [vmem:[%s4072_s4 + $0x44] sm:$0x1]  ;;  %v597_v8 = vrot.slane %v525_v61, 5  ;;  %v3049_v13 = vrot.slane %v524_v60, 9  ;;  %v527_v17 = vld [vmem:[%s4072_s4 + $0x48] sm:$0xe]  ;;  %v3217_v19 = vcombine.low %v1748_v3, %v1751_v5  ;;  %v1755_v32 = vsel %vm4124_vm6, %v3209_v62, %v1754_v48 }
  0x3f   : > { %v591_v10 = vsel %vm4074_vm4, %v3048_v55, %v590_v0  ;;  %v592_v11 = vrot.slane %v590_v0, 4  ;;  %v600_v16 = vrot.slane %v526_v1, 5  ;;  %v529_v21 = vld [vmem:[%s4072_s4 + $0x50] sm:$0x1]  ;;  %v3050_v22 = vrot.slane %v527_v17, 9  ;;  %v3836_v3 = vld [vmem:[%s4072_s4 + $0x3c] sm:$0xff]  }
  0x40   : > { %3472 = vmatmul.mubr.msk.bf16.vlgmr.msra.gmra.mrb[0].mxu1 %vm351_vm3, %v3054_v29  ;;  %v599_v15 = vrot.slane %v597_v8, 4  ;;  %v607_v25 = vrot.slane %v529_v21, 5  ;;  %v530_v50 = vld [vmem:[%s4072_s4 + $0x54] sm:$0xe]  ;;  %v531_v26 = vld [vmem:[%s4072_s4 + $0x58] sm:$0xf]  ;;  %v598_v29 = vsel %vm4074_vm4, %v3049_v13, %v597_v8  ;;  %v1758_v33 = vsel %vm4124_vm6, %v1756_v7, %v1757_v63 }
  0x41   : > { %3548 = vmatmul.mubr.msk.bf16.gmra.mrb[4].mxu0 %vm351_vm3, %v3214_v18  ;;  %3488 = vmatpush3.bf16.msra.mxu1 %v4135_v56  ;;  %v593_v56 = vrot.slane %v523_v54, 5  ;;  %v528_v18 = vld [vmem:[%s4072_s4 + $0x4c] sm:$0xf]  ;;  %v611_v28 = vrot.slane %v531_v26, 5  ;;  %v532_v31 = vld [vmem:[%s4072_s4 + $0x5c] sm:$0x1]  ;;  %v3218_v47 = vcombine.low %v1755_v32, %v1758_v33 }
  0x42   : > { %3551 = vmatprep.mubr.msk.bf16.mxu0 %vm351_vm3, %v3215_v39  ;;  %3475 = vmatprep.mubr.msk.bf16.mxu1 %vm351_vm3, %v3055_v40  ;;  %v604_v23 = vrot.slane %v528_v18, 5  ;;  %v601_v30 = vsel %vm4074_vm4, %v599_v15, %v600_v16  ;;  %v814_v36 = vld [vmem:[%s4072_s4] sm:$0xc]  ;;  %v815_v37 = vld [vmem:[%s4072_s4 + $0x4] sm:$0xf]  ;;  %v3051_v38 = vrot.slane %v530_v50, 9 }
  0x43   : > { %3746 = vmatprep.subr.msk.bf16.mxu1 %vm376_vm0, %v4233_v45  ;;  %v594_v20 = vsel %vm4074_vm4, %v592_v11, %v593_v56  ;;  %v816_v39 = vld [vmem:[%s4072_s4 + $0x8] sm:$0x3]  ;;  %v867_v40 = vrot.slane %v815_v37, 6  ;;  %v3058_v41 = vcombine.low %v598_v29, %v601_v30  ;;  %v3835_v42 = vld [vmem:[%s4072_s4 + $0x30] sm:$0xff]   ;;  %v613_v43 = vrot.slane %v611_v28, 4  ;;  %v3839_v33 = vld [vmem:[%s4072_s4 + $0x60] sm:$0xff]  }
  0x44   : > { %v3057_v24 = vcombine.low %v591_v10, %v594_v20  ;;  %v606_v27 = vrot.slane %v604_v23, 4  ;;  %v605_v34 = vsel %vm4074_vm4, %v3050_v22, %v604_v23  ;;  %v614_v44 = vrot.slane %v532_v31, 5  ;;  %v818_v49 = vld [vmem:[%s4072_s4 + $0x10] sm:$0xf]  ;;  %v821_v54 = vld [vmem:[%s4072_s4 + $0x1c] sm:$0xf] }
  0x45   : > { %v3069_v46 = vrot.slane %v814_v36, 10  ;;  %v869_v52 = vrot.slane %v867_v40, 4  ;;  %v870_v53 = vrot.slane %v816_v39, 6  ;;  %v612_v55 = vsel %vm4074_vm4, %v3051_v38, %v611_v28  ;;  %v817_v58 = vld [vmem:[%s4072_s4 + $0xc] sm:$0xc]  ;;  %v3838_v28 = vld [vmem:[%s4072_s4 + $0x54] sm:$0xff]  }
  0x46   : > { %v608_v35 = vsel %vm4074_vm4, %v606_v27, %v607_v25  ;;  %v615_v57 = vsel %vm4074_vm4, %v613_v43, %v614_v44  ;;  %v874_v59 = vrot.slane %v818_v49, 6  ;;  %v819_v62 = vld [vmem:[%s4072_s4 + $0x14] sm:$0x3]  ;;  %v881_v63 = vrot.slane %v821_v54, 6  ;;  %v820_v56 = vld [vmem:[%s4072_s4 + $0x18] sm:$0xc] }
  0x47   : > { %v3059_v48 = vcombine.low %v605_v34, %v608_v35  ;;  %v868_v60 = vsel %vm4124_vm6, %v3069_v46, %v867_v40  ;;  %v871_v61 = vsel %vm4124_vm6, %v869_v52, %v870_v53  ;;  %v3060_v0 = vcombine.low %v612_v55, %v615_v57  ;;  %v822_v1 = vld [vmem:[%s4072_s4 + $0x20] sm:$0x3]  ;;  %v3837_v10 = vld [vmem:[%s4072_s4 + $0x48] sm:$0xff]   ;;  %v827_v17 = vld [vmem:[%s4072_s4 + $0x34] sm:$0xf] }
  0x48   : > { %3476 = vmatmul.mubr.msk.bf16.gmra.mrb[4].mxu1 %vm351_vm3, %v3056_v9  ;;  %v3078_v5 = vcombine.low %v868_v60, %v871_v61  ;;  %v3070_v7 = vrot.slane %v817_v58, 10  ;;  %v876_v8 = vrot.slane %v874_v59, 4  ;;  %v877_v9 = vrot.slane %v819_v62, 6  ;;  %v824_v11 = vld [vmem:[%s4072_s4 + $0x28] sm:$0xf]  ;;  %v3840_v55 = vld [vmem:[%s4072_s4 + $0x6c] sm:$0xff]  }
  0x49   : > { %3552 = vmatmul.mubr.msk.bf16.gmra.mrb[8].mxu0 %vm351_vm3, %v3216_v14  ;;  %3479 = vmatprep.mubr.msk.bf16.mxu1 %vm351_vm3, %v3057_v24  ;;  %v2362_v13 = vsel %vm376_vm0, %v4200_v12, 0  ;;  %v3071_v14 = vrot.slane %v820_v56, 10  ;;  %v883_v15 = vrot.slane %v881_v63, 4  ;;  %v884_v16 = vrot.slane %v822_v1, 6  ;;  %v4319_v18 = vld [vmem:[%s4674_s1 + $0x10] sm:$0x3] }
  0x4a   : > { %3555 = vmatprep.mubr.msk.bf16.mxu0 %vm351_vm3, %v3217_v19  ;;  %v875_v12 = vsel %vm4124_vm6, %v3070_v7, %v874_v59  ;;  %v878_v19 = vsel %vm4124_vm6, %v876_v8, %v877_v9  ;;  %v888_v20 = vrot.slane %v824_v11, 6  ;;  %v823_v21 = vld [vmem:[%s4072_s4 + $0x24] sm:$0xc]  ;;  %v825_v22 = vld [vmem:[%s4072_s4 + $0x2c] sm:$0x3]  ;;  %v895_v23 = vrot.slane %v827_v17, 6 }
  0x4b   : > { %v882_v24 = vsel %vm4124_vm6, %v3071_v14, %v881_v63  ;;  %v885_v25 = vsel %vm4124_vm6, %v883_v15, %v884_v16  ;;  %v826_v50 = vld [vmem:[%s4072_s4 + $0x30] sm:$0xc]  ;;  %v828_v26 = vld [vmem:[%s4072_s4 + $0x38] sm:$0x3]  ;;  %v3079_v27 = vcombine.low %v875_v12, %v878_v19  ;;  %v1222_v29 = vsel %vm376_vm0, %v4233_v45, 0 }
  0x4c   : > { %v3072_v30 = vrot.slane %v823_v21, 10  ;;  %v890_v31 = vrot.slane %v888_v20, 4  ;;  %v891_v32 = vrot.slane %v825_v22, 6  ;;  %v3080_v34 = vcombine.low %v882_v24, %v885_v25  ;;  %v830_v38 = vld [vmem:[%s4072_s4 + $0x40] sm:$0xf]  ;;  %v3841_v61 = vld [vmem:[%s4072_s4 + $0x78] sm:$0xff]  }
  0x4d   : > { %v3073_v35 = vrot.slane %v826_v50, 10  ;;  %v897_v36 = vrot.slane %v895_v23, 4  ;;  %v898_v37 = vrot.slane %v828_v26, 6  ;;  %v3263_v39 = vld [vmem:[%s4072_s4 + $0x34] sm:$0xf]  ;;  %v902_v44 = vrot.slane %v830_v38, 6 }
  0x4e   : > { %v833_v40 = vld [vmem:[%s4072_s4 + $0x4c] sm:$0xf]  ;;  %v889_v45 = vsel %vm4124_vm6, %v3072_v30, %v888_v20  ;;  %v892_v43 = vsel %vm4124_vm6, %v890_v31, %v891_v32  ;;  %v3262_v46 = vld [vmem:[%s4072_s4 + $0x30] sm:$0xe]  ;;  %v2241_v49 = vrot.slane %v3263_v39, 5  ;;  %v3842_v26 = vld [vmem:[%s4072_s4 + $0x84] sm:$0xff]  }
  0x4f   : > { %v832_v52 = vld [vmem:[%s4072_s4 + $0x48] sm:$0xc]  ;;  %v909_v53 = vrot.slane %v833_v40, 6  ;;  %v834_v54 = vld [vmem:[%s4072_s4 + $0x50] sm:$0x3]  ;;  %v3081_v57 = vcombine.low %v889_v45, %v892_v43  ;;  %v904_v63 = vrot.slane %v902_v44, 4 }
  0x50   : > { %3480 = vmatmul.mubr.msk.bf16.gmra.mrb[8].mxu1 %vm351_vm3, %v3058_v41  ;;  %v829_v41 = vld [vmem:[%s4072_s4 + $0x3c] sm:$0xc]  ;;  %v3264_v60 = vld [vmem:[%s4072_s4 + $0x38] sm:$0x1]  ;;  %v3266_v56 = vld [vmem:[%s4072_s4 + $0x40] sm:$0xf] }
  0x51   : > { %3556 = vmatmul.mubr.msk.bf16.gmra.mrb[12].mxu0 %vm351_vm3, %v3218_v47  ;;  %3483 = vmatprep.mubr.msk.bf16.mxu1 %vm351_vm3, %v3059_v48  ;;  %v896_v47 = vsel %vm4124_vm6, %v3073_v35, %v895_v23  ;;  %v899_v48 = vsel %vm4124_vm6, %v897_v36, %v898_v37  ;;  %v3074_v58 = vrot.slane %v829_v41, 10  ;;  %v3075_v1 = vrot.slane %v832_v52, 10  ;;  %v836_v7 = vld [vmem:[%s4072_s4 + $0x58] sm:$0xf]  ;;  %v3269_v9 = vld [vmem:[%s4072_s4 + $0x4c] sm:$0xf] }
  0x52   : > { %3561 = vmatprep.mubr.msk.bf16.mxu0 %vm351_vm3, %v3835_v42  ;;  %v831_v42 = vld [vmem:[%s4072_s4 + $0x44] sm:$0x3]  ;;  %v3082_v62 = vcombine.low %v896_v47, %v899_v48  ;;  %v2243_v8 = vrot.slane %v2241_v49, 4  ;;  %v916_v15 = vrot.slane %v836_v7, 6  ;;  %v2248_v16 = vrot.slane %v3266_v56, 5 }
  0x53   : > { %v905_v59 = vrot.slane %v831_v42, 6  ;;  %v3267_v14 = vld [vmem:[%s4072_s4 + $0x44] sm:$0x1]  ;;  %v910_v17 = vsel %vm4124_vm6, %v3075_v1, %v909_v53  ;;  %v835_v19 = vld [vmem:[%s4072_s4 + $0x54] sm:$0xc]  ;;  %v2255_v24 = vrot.slane %v3269_v9, 5 }
  0x54   : > { %v837_v20 = vld [vmem:[%s4072_s4 + $0x5c] sm:$0x3]  ;;  %v3268_v23 = vld [vmem:[%s4072_s4 + $0x48] sm:$0xe]  ;;  %v3270_v50 = vld [vmem:[%s4072_s4 + $0x50] sm:$0x1] }
  0x55   : > { %v906_v11 = vsel %vm4124_vm6, %v904_v63, %v905_v59  ;;  %v919_v30 = vrot.slane %v837_v20, 6  ;;  %v3288_v35 = vrot.slane %v3268_v23, 9  ;;  %v2257_v36 = vrot.slane %v2255_v24, 4  ;;  %v3272_v38 = vld [vmem:[%s4072_s4 + $0x58] sm:$0xf] }
  0x56   : > { %v2258_v37 = vrot.slane %v3270_v50, 5  ;;  %v3275_v39 = vld [vmem:[%s4072_s4 + $0x64] sm:$0xf]  ;;  %v2262_v43 = vrot.slane %v3272_v38, 5  ;;  %v3271_v47 = vld [vmem:[%s4072_s4 + $0x54] sm:$0xe] }
  0x57   : > { %v3273_v48 = vld [vmem:[%s4072_s4 + $0x5c] sm:$0x1]  ;;  %v3289_v59 = vrot.slane %v3271_v47, 9  ;;  %v3278_v1 = vld [vmem:[%s4072_s4 + $0x70] sm:$0xf] }
  0x58   : > { %3484 = vmatmul.mubr.msk.bf16.gmra.mrb[12].mxu1 %vm351_vm3, %v3060_v0  ;;  %v3286_v0 = vrot.slane %v3262_v46, 9  ;;  %v2259_v46 = vsel %vm4074_vm4, %v2257_v36, %v2258_v37  ;;  %v2276_v7 = vrot.slane %v3278_v1, 5  ;;  %v3277_v9 = vld [vmem:[%s4072_s4 + $0x6c] sm:$0xe]  ;;  %v3312_v50 = vld [vmem:[%s4072_s4 + $0x34] sm:$0xf] }
  0x59   : > { %3562 = vmatmul.mubr.msk.bf16.vlgmr.msra.gmra.mrb[0].mxu0 %vm351_vm3, %v3836_v3  ;;  %3489 = vmatprep.mubr.msk.bf16.mxu1 %vm351_vm3, %v3078_v5  ;;  %v911_v3 = vrot.slane %v909_v53, 4  ;;  %v912_v5 = vrot.slane %v834_v54, 6  ;;  %v3274_v53 = vld [vmem:[%s4072_s4 + $0x60] sm:$0xe]  ;;  %v3276_v54 = vld [vmem:[%s4072_s4 + $0x68] sm:$0x1] }
  0x5a   : > { %3578 = vmatpush3.bf16.msra.mxu0 %v2362_v13  ;;  %3565 = vmatprep.mubr.msk.bf16.mxu0 %vm351_vm3, %v3837_v10  ;;  %v903_v10 = vsel %vm4124_vm6, %v3074_v58, %v902_v44  ;;  %v3265_v13 = vld [vmem:[%s4072_s4 + $0x3c] sm:$0xe]  ;;  %v2242_v21 = vsel %vm4074_vm4, %v3286_v0, %v2241_v49  ;;  %v2256_v44 = vsel %vm4074_vm4, %v3288_v35, %v2255_v24  ;;  %v2269_v49 = vrot.slane %v3275_v39, 5  ;;  %v3313_v35 = vld [vmem:[%s4072_s4 + $0x38] sm:$0x3]  ;;  %v3847_v37 = vld [vmem:[%s4072_s4 + $0x48] sm:$0xff]  }
  0x5b   : > { %3752 = vmatprep.subr.msk.bf16.mxu0 %vm376_vm0, %v4319_v18  ;;  %v913_v12 = vsel %vm4124_vm6, %v911_v3, %v912_v5  ;;  %v3083_v25 = vcombine.low %v903_v10, %v906_v11  ;;  %v3287_v32 = vrot.slane %v3265_v13, 9  ;;  %v3297_v58 = vcombine.low %v2256_v44, %v2259_v46  ;;  %v3281_v3 = vld [vmem:[%s4072_s4 + $0x7c] sm:$0xf]  ;;  %v3279_v10 = vld [vmem:[%s4072_s4 + $0x74] sm:$0x1]  ;;  %v3844_v13 = vld [vmem:[%s4072_s4 + $0x24] sm:$0xff]  }
  0x5c   : > { %v3290_v63 = vrot.slane %v3274_v53, 9  ;;  %v2271_v0 = vrot.slane %v2269_v49, 4  ;;  %v2272_v56 = vrot.slane %v3276_v54, 5  ;;  %v2283_v11 = vrot.slane %v3281_v3, 5  ;;  %v3142_v46 = vld [vmem:[%s4072_s4 + $0x4c] sm:$0xf] }
  0x5d   : > { %v2249_v42 = vsel %vm4074_vm4, %v3287_v32, %v2248_v16  ;;  %v2279_v20 = vrot.slane %v3279_v10, 5  ;;  %v2543_v32 = vrot.slane %v3312_v50, 6  ;;  %v2546_v44 = vrot.slane %v3313_v35, 6  ;;  %v3318_v47 = vld [vmem:[%s4072_s4 + $0x4c] sm:$0xf] }
  0x5e   : > { %v2285_v23 = vrot.slane %v2283_v11, 4  ;;  %v3314_v53 = vld [vmem:[%s4072_s4 + $0x3c] sm:$0xc]  ;;  %v3316_v54 = vld [vmem:[%s4072_s4 + $0x44] sm:$0x3] }
  0x5f   : > { %v3336_v1 = vrot.slane %v3314_v53, 10  ;;  %v3327_v53 = vld [vmem:[%s4072_s4 + $0x70] sm:$0xf] }
  0x60   : > { %3490 = vmatmul.mubr.msk.bf16.vlgmr.msra.gmra.mrb[0].mxu1 %vm351_vm3, %v3079_v27  ;;  %v3084_v27 = vcombine.low %v910_v17, %v913_v12  ;;  %v3291_v12 = vrot.slane %v3277_v9, 9 }
  0x61   : > { %3566 = vmatmul.mubr.msk.bf16.gmra.mrb[4].mxu0 %vm351_vm3, %v3838_v28  ;;  %3506 = vmatpush3.bf16.msra.mxu1 %v1222_v29  ;;  %v3076_v28 = vrot.slane %v835_v19, 10  ;;  %v918_v29 = vrot.slane %v916_v15, 4  ;;  %v2278_v19 = vrot.slane %v2276_v7, 4 }
  0x62   : > { %3569 = vmatprep.mubr.msk.bf16.mxu0 %vm351_vm3, %v3839_v33  ;;  %3493 = vmatprep.mubr.msk.bf16.mxu1 %vm351_vm3, %v3080_v34  ;;  %v2250_v33 = vrot.slane %v2248_v16, 4  ;;  %v2251_v34 = vrot.slane %v3267_v14, 5  ;;  %v3280_v14 = vld [vmem:[%s4072_s4 + $0x78] sm:$0xe] }
  0x63   : > { %3748 = vmatprep.subr.msk.bf16.mxu1 %vm376_vm0, %v4050_v2  ;;  %v2244_v2 = vrot.slane %v3264_v60, 5  ;;  %v917_v40 = vsel %vm4124_vm6, %v3076_v28, %v916_v15  ;;  %v920_v41 = vsel %vm4124_vm6, %v918_v29, %v919_v30  ;;  %v2264_v60 = vrot.slane %v2262_v43, 4  ;;  %v3282_v15 = vld [vmem:[%s4072_s4 + $0x80] sm:$0x1] }
  0x64   : > { %v2252_v45 = vsel %vm4074_vm4, %v2250_v33, %v2251_v34  ;;  %v3085_v52 = vcombine.low %v917_v40, %v920_v41  ;;  %v2286_v24 = vrot.slane %v3282_v15, 5  ;;  %v3846_v33 = vld [vmem:[%s4072_s4 + $0x3c] sm:$0xff]   ;;  %v3311_v34 = vld [vmem:[%s4072_s4 + $0x30] sm:$0xc] }
  0x65   : > { %v2245_v22 = vsel %vm4074_vm4, %v2243_v8, %v2244_v2  ;;  %v2270_v8 = vsel %vm4074_vm4, %v3290_v63, %v2269_v49  ;;  %v2273_v2 = vsel %vm4074_vm4, %v2271_v0, %v2272_v56  ;;  %v3317_v63 = vld [vmem:[%s4072_s4 + $0x48] sm:$0xc]  ;;  %v3319_v0 = vld [vmem:[%s4072_s4 + $0x50] sm:$0x3] }
  0x66   : > { %v3295_v31 = vcombine.low %v2242_v21, %v2245_v22  ;;  %v3299_v17 = vcombine.low %v2270_v8, %v2273_v2  ;;  %v3845_v21 = vld [vmem:[%s4072_s4 + $0x30] sm:$0xff]   ;;  %v3292_v22 = vrot.slane %v3280_v14, 9  ;;  %v2287_v30 = vsel %vm4074_vm4, %v2285_v23, %v2286_v24 }
  0x67   : > { %v2560_v15 = vrot.slane %v3319_v0, 6  ;;  %v3850_v24 = vld [vmem:[%s4072_s4 + $0x6c] sm:$0xff]  }
  0x68   : > { %3494 = vmatmul.mubr.msk.bf16.gmra.mrb[4].mxu1 %vm351_vm3, %v3081_v57  ;;  %v3843_v57 = vld [vmem:[%s4072_s4 + $0x18] sm:$0xff]   ;;  %v2284_v29 = vsel %vm4074_vm4, %v3292_v22, %v2283_v11  ;;  %v3150_v0 = vld [vmem:[%s4072_s4 + $0x6c] sm:$0xe] }
  0x69   : > { %3570 = vmatmul.mubr.msk.bf16.gmra.mrb[8].mxu0 %vm351_vm3, %v3840_v55  ;;  %3497 = vmatprep.mubr.msk.bf16.mxu1 %vm351_vm3, %v3082_v62  ;;  %v3296_v55 = vcombine.low %v2249_v42, %v2252_v45  ;;  %v2664_v62 = vsel %vm376_vm0, %v4319_v18, 0  ;;  %v2263_v18 = vsel %vm4074_vm4, %v3289_v59, %v2262_v43  ;;  %v3301_v38 = vcombine.low %v2284_v29, %v2287_v30  ;;  %v3315_v42 = vld [vmem:[%s4072_s4 + $0x40] sm:$0xf]  ;;  %v3145_v11 = vld [vmem:[%s4072_s4 + $0x58] sm:$0xf] }
  0x6a   : > { %3573 = vmatprep.mubr.msk.bf16.mxu0 %vm351_vm3, %v3841_v61  ;;  %v2265_v61 = vrot.slane %v3273_v48, 5  ;;  %v3335_v45 = vrot.slane %v3311_v34, 10  ;;  %v2545_v43 = vrot.slane %v2543_v32, 4  ;;  %v2550_v48 = vrot.slane %v3315_v42, 6  ;;  %v3322_v22 = vld [vmem:[%s4072_s4 + $0x5c] sm:$0x3] }
  0x6b   : > { %v2557_v59 = vrot.slane %v3318_v47, 6  ;;  %v1438_v23 = vrot.slane %v3145_v11, 5  ;;  %v3151_v47 = vld [vmem:[%s4072_s4 + $0x70] sm:$0xf] }
  0x6c   : > { %v2266_v5 = vsel %vm4074_vm4, %v2264_v60, %v2265_v61  ;;  %v3141_v60 = vld [vmem:[%s4072_s4 + $0x48] sm:$0xe]  ;;  %v3143_v61 = vld [vmem:[%s4072_s4 + $0x50] sm:$0x1]  ;;  %v2552_v3 = vrot.slane %v2550_v48, 4 }
  0x6d   : > { %v3298_v16 = vcombine.low %v2263_v18, %v2266_v5  ;;  %v2553_v18 = vrot.slane %v3316_v54, 6  ;;  %v3849_v5 = vld [vmem:[%s4072_s4 + $0x60] sm:$0xff]   ;;  %v3157_v2 = vrot.slane %v3141_v60, 9  ;;  %v1434_v10 = vrot.slane %v3143_v61, 5 }
  0x6e   : > { %v2559_v14 = vrot.slane %v2557_v59, 4  ;;  %v1452_v60 = vrot.slane %v3151_v47, 5  ;;  %v2578_v61 = vrot.slane %v3327_v53, 6 }
  0x70   : > { %3498 = vmatmul.mubr.msk.bf16.gmra.mrb[8].mxu1 %vm351_vm3, %v3083_v25  ;;  %v3284_v25 = vld [vmem:[%s4072_s4 + $0x88] sm:$0xf]  ;;  %v2561_v30 = vsel %vm4124_vm6, %v2559_v14, %v2560_v15  ;;  %v1454_v14 = vrot.slane %v1452_v60, 4 }
  0x71   : > { %3574 = vmatmul.mubr.msk.bf16.gmra.mrb[12].mxu0 %vm351_vm3, %v3842_v26  ;;  %3501 = vmatprep.mubr.msk.bf16.mxu1 %vm351_vm3, %v3084_v27  ;;  %v2277_v26 = vsel %vm4074_vm4, %v3291_v12, %v2276_v7  ;;  %v2280_v27 = vsel %vm4074_vm4, %v2278_v19, %v2279_v20  ;;  %v2290_v28 = vrot.slane %v3284_v25, 5  ;;  %v3321_v7 = vld [vmem:[%s4072_s4 + $0x58] sm:$0xf]  ;;  %v3324_v19 = vld [vmem:[%s4072_s4 + $0x64] sm:$0xf]  ;;  %v2551_v20 = vsel %vm4124_vm6, %v3336_v1, %v2550_v48 }
  0x72   : > { %3579 = vmatprep.mubr.msk.bf16.mxu0 %vm351_vm3, %v3295_v31  ;;  %v3283_v31 = vld [vmem:[%s4072_s4 + $0x84] sm:$0xe]  ;;  %v3300_v36 = vcombine.low %v2277_v26, %v2280_v27  ;;  %v2564_v12 = vrot.slane %v3321_v7, 6  ;;  %v3144_v26 = vld [vmem:[%s4072_s4 + $0x54] sm:$0xe] }
  0x73   : > { %v3293_v39 = vrot.slane %v3283_v31, 9  ;;  %v2292_v40 = vrot.slane %v2290_v28, 4  ;;  %v3146_v27 = vld [vmem:[%s4072_s4 + $0x5c] sm:$0x1] }
  0x74   : > { %v2566_v35 = vrot.slane %v2564_v12, 4  ;;  %v1441_v42 = vrot.slane %v3146_v27, 5 }
  0x75   : > { %v2291_v49 = vsel %vm4074_vm4, %v3293_v39, %v2290_v28 }
  0x78   : > { %3502 = vmatmul.mubr.msk.bf16.gmra.mrb[12].mxu1 %vm351_vm3, %v3085_v52 }
  0x79   : > { %3580 = vmatmul.mubr.msk.bf16.vlgmr.msra.gmra.mrb[0].mxu0 %vm351_vm3, %v3296_v55  ;;  %3507 = vmatprep.mubr.msk.bf16.mxu1 %vm351_vm3, %v3843_v57  ;;  %v1431_v55 = vrot.slane %v3142_v46, 5  ;;  %v2544_v57 = vsel %vm4124_vm6, %v3335_v45, %v2543_v32  ;;  %v3147_v32 = vld [vmem:[%s4072_s4 + $0x60] sm:$0xe] }
  0x7a   : > { %3596 = vmatpush3.bf16.msra.mxu0 %v2664_v62  ;;  %3583 = vmatprep.mubr.msk.bf16.mxu0 %vm351_vm3, %v3297_v58  ;;  %v2547_v58 = vsel %vm4124_vm6, %v2545_v43, %v2546_v44  ;;  %v3848_v62 = vld [vmem:[%s4072_s4 + $0x54] sm:$0xff]   ;;  %v3159_v43 = vrot.slane %v3147_v32, 9 }
  0x7b   : > { %v3344_v8 = vcombine.low %v2544_v57, %v2547_v58  ;;  %v1433_v9 = vrot.slane %v1431_v55, 4  ;;  %v1432_v25 = vsel %vm4074_vm4, %v3157_v2, %v1431_v55  ;;  %v3330_v55 = vld [vmem:[%s4072_s4 + $0x7c] sm:$0xf] }
  0x7c   : > { %v2585_v7 = vrot.slane %v3330_v55, 6 }
  0x7d   : > { %v1435_v50 = vsel %vm4074_vm4, %v1433_v9, %v1434_v10  ;;  %v3329_v9 = vld [vmem:[%s4072_s4 + $0x78] sm:$0xc]  ;;  %v3331_v10 = vld [vmem:[%s4072_s4 + $0x80] sm:$0x3] }
  0x7e   : > { %v3166_v39 = vcombine.low %v1432_v25, %v1435_v50 }
  0x80   : > { %3508 = vmatmul.mubr.msk.bf16.vlgmr.msra.gmra.mrb[0].mxu1 %vm351_vm3, %v3844_v13  ;;  %v3337_v13 = vrot.slane %v3317_v63, 10 }
  0x81   : > { %3584 = vmatmul.mubr.msk.bf16.gmra.mrb[4].mxu0 %vm351_vm3, %v3298_v16  ;;  %3614 = vmatpush3.bf16.msra.mxu1 %v4060_v4  ;;  %v3285_v4 = vld [vmem:[%s4072_s4 + $0x8c] sm:$0x1]  ;;  %v3148_v16 = vld [vmem:[%s4072_s4 + $0x64] sm:$0xf] }
  0x82   : > { %3587 = vmatprep.mubr.msk.bf16.mxu0 %vm351_vm3, %v3299_v17  ;;  %3511 = vmatprep.mubr.msk.bf16.mxu1 %vm351_vm3, %v3845_v21  ;;  %v2293_v41 = vrot.slane %v3285_v4, 5  ;;  %v3320_v17 = vld [vmem:[%s4072_s4 + $0x54] sm:$0xc]  ;;  %v2554_v21 = vsel %vm4124_vm6, %v2552_v3, %v2553_v18  ;;  %v1445_v28 = vrot.slane %v3148_v16, 5  ;;  %v2558_v29 = vsel %vm4124_vm6, %v3337_v13, %v2557_v59  ;;  %v3326_v18 = vld [vmem:[%s4072_s4 + $0x6c] sm:$0xc] }
  0x83   : > { %v3338_v31 = vrot.slane %v3320_v17, 10  ;;  %v2571_v4 = vrot.slane %v3324_v19, 6  ;;  %v3345_v34 = vcombine.low %v2551_v20, %v2554_v21  ;;  %v3346_v45 = vcombine.low %v2558_v29, %v2561_v30  ;;  %v3332_v30 = vld [vmem:[%s4072_s4 + $0x84] sm:$0xc] }
  0x84   : > { %v2294_v52 = vsel %vm4074_vm4, %v2292_v40, %v2293_v41  ;;  %v3158_v40 = vrot.slane %v3144_v26, 9  ;;  %v1440_v41 = vrot.slane %v1438_v23, 4  ;;  %v1447_v44 = vrot.slane %v1445_v28, 4 }
  0x85   : > { %v3302_v56 = vcombine.low %v2291_v49, %v2294_v52  ;;  %v2573_v49 = vrot.slane %v2571_v4, 4  ;;  %v2565_v54 = vsel %vm4124_vm6, %v3338_v31, %v2564_v12  ;;  %v3160_v13 = vrot.slane %v3150_v0, 9  ;;  %v3334_v31 = vld [vmem:[%s4072_s4 + $0x8c] sm:$0x3] }
  0x86   : > { %v1439_v58 = vsel %vm4074_vm4, %v3158_v40, %v1438_v23  ;;  %v1442_v59 = vsel %vm4074_vm4, %v1440_v41, %v1441_v42  ;;  %v3340_v17 = vrot.slane %v3326_v18, 10  ;;  %v2580_v12 = vrot.slane %v2578_v61, 4  ;;  %v3333_v23 = vld [vmem:[%s4072_s4 + $0x88] sm:$0xf] }
  0x87   : > { %v3167_v2 = vcombine.low %v1439_v58, %v1442_v59  ;;  %v3341_v20 = vrot.slane %v3329_v9, 10  ;;  %v2587_v21 = vrot.slane %v2585_v7, 4  ;;  %v2592_v27 = vrot.slane %v3333_v23, 6 }
  0x88   : > { %3512 = vmatmul.mubr.msk.bf16.gmra.mrb[4].mxu1 %vm351_vm3, %v3846_v33  ;;  %v3149_v33 = vld [vmem:[%s4072_s4 + $0x68] sm:$0x1]  ;;  %v2579_v50 = vsel %vm4124_vm6, %v3340_v17, %v2578_v61 }
  0x89   : > { %3588 = vmatmul.mubr.msk.bf16.gmra.mrb[8].mxu0 %vm351_vm3, %v3300_v36  ;;  %3515 = vmatprep.mubr.msk.bf16.mxu1 %vm351_vm3, %v3847_v37  ;;  %v2567_v36 = vrot.slane %v3322_v22, 6  ;;  %v3323_v37 = vld [vmem:[%s4072_s4 + $0x60] sm:$0xc]  ;;  %v1448_v46 = vrot.slane %v3149_v33, 5  ;;  %v2588_v22 = vrot.slane %v3331_v10, 6  ;;  %v3342_v33 = vrot.slane %v3332_v30, 10 }
  0x8a   : > { %3591 = vmatprep.mubr.msk.bf16.mxu0 %vm351_vm3, %v3301_v38  ;;  %v3325_v38 = vld [vmem:[%s4072_s4 + $0x68] sm:$0x3]  ;;  %v3339_v48 = vrot.slane %v3323_v37, 10 }
  0x8b   : > { %v2574_v52 = vrot.slane %v3325_v38, 6  ;;  %v2568_v57 = vsel %vm4124_vm6, %v2566_v35, %v2567_v36  ;;  %v1449_v63 = vsel %vm4074_vm4, %v1447_v44, %v1448_v46  ;;  %v2589_v29 = vsel %vm4124_vm6, %v2587_v21, %v2588_v22 }
  0x8c   : > { %v2572_v1 = vsel %vm4124_vm6, %v3339_v48, %v2571_v4  ;;  %v2595_v35 = vrot.slane %v3334_v31, 6  ;;  %v2593_v36 = vsel %vm4124_vm6, %v3342_v33, %v2592_v27  ;;  %v4571_v48 = vld [vmem:[%s4675_s2] ss:$0 sm:$0xff] }
  0x8d   : > { %v2575_v3 = vsel %vm4124_vm6, %v2573_v49, %v2574_v52 }
  0x8e   : > { %v3348_v16 = vcombine.low %v2572_v1, %v2575_v3 }
  0x90   : > { %3516 = vmatmul.mubr.msk.bf16.gmra.mrb[8].mxu1 %vm351_vm3, %v3848_v62  ;;  %v1446_v62 = vsel %vm4074_vm4, %v3159_v43, %v1445_v28  ;;  %v2586_v28 = vsel %vm4124_vm6, %v3341_v20, %v2585_v7 }
  0x91   : > { %3592 = vmatmul.mubr.msk.bf16.gmra.mrb[12].mxu0 %vm351_vm3, %v3302_v56  ;;  %3519 = vmatprep.mubr.msk.bf16.mxu1 %vm351_vm3, %v3849_v5  ;;  %v3152_v56 = vld [vmem:[%s4072_s4 + $0x74] sm:$0x1]  ;;  %v3168_v11 = vcombine.low %v1446_v62, %v1449_v63  ;;  %v3350_v32 = vcombine.low %v2586_v28, %v2589_v29 }
  0x92   : > { %3597 = vmatprep.mubr.msk.bf16.mxu0 %vm351_vm3, %v3344_v8  ;;  %v3328_v5 = vld [vmem:[%s4072_s4 + $0x74] sm:$0x3]  ;;  %v3347_v8 = vcombine.low %v2565_v54, %v2568_v57  ;;  %v1455_v15 = vrot.slane %v3152_v56, 5  ;;  %s3023_s4 = sshll.u32 %s231_s27, 7 }
  0x93   : > { %v2581_v19 = vrot.slane %v3328_v5, 6  ;;  %s4579_s5 = scalar_lea.vmem [#allocation3], %s3023_s4 }
  0x94   : > { %v1456_v25 = vsel %vm4074_vm4, %v1454_v14, %v1455_v15  ;;  %s2887_s16 = sshll.u32 %s4579_s5, 4  ;;  %s4614_s16 = int_to_ptr.vmem [resolvable:$true] %s2887_s16 }
  0x95   : > { %v2582_v26 = vsel %vm4124_vm6, %v2580_v12, %v2581_v19  ;;  %s3851_s21 = scalar_lea.vmem %s4614_s16, 2048  ;;  %p3858_p2 = scmp.lt.s32.totalorder %s4614_s16, %s3856_s28 }
  0x96   : > { %v3349_v6 = vcombine.low %v2579_v50, %v2582_v26  ;;  %p3852_p13 = scmp.ne.s32.totalorder %s4614_s16, %s3851_s21  ;;  %p3859_p4 = scmp.lt.s32.totalorder %s3857_s29, %s3851_s21 }
  0x98   : > { %3520 = vmatmul.mubr.msk.bf16.gmra.mrb[12].mxu1 %vm351_vm3, %v3850_v24  ;;  %v1453_v24 = vsel %vm4074_vm4, %v3160_v13, %v1452_v60  ;;  %p3853_p0 = pnand %p3852_p13, %p4021_p3  ;;  %p3860_p5 = por %p3859_p4, %p3858_p2 }
  0x99   : > { %3598 = vmatmul.mubr.msk.bf16.vlgmr.msra.gmra.mrb[0].mxu0 %vm351_vm3, %v3345_v34  ;;  %3533 = vmatprep.mubr.msk.bf16.mxu1 %vm351_vm3, %v3166_v39  ;;  %v3169_v4 = vcombine.low %v1453_v24, %v1456_v25  ;;  %v2594_v34 = vrot.slane %v2592_v27, 4 }
  0x9a   : > { %3601 = vmatprep.mubr.msk.bf16.mxu0 %vm351_vm3, %v3346_v45  ;;  %p3854_p1 = pneg %p3853_p0 }
  0x9b   : > { %v2596_v37 = vsel %vm4124_vm6, %v2594_v34, %v2595_v35 }
  0x9c   : > { %v3351_v38 = vcombine.low %v2593_v36, %v2596_v37  ;;  %p3861_p6 = pnand %p3860_p5, %p3854_p1 }
  0xa0   : > { %3534 = vmatmul.mubr.msk.bf16.vlgmr.msra.gmra.mrb[8].mxu1 %vm351_vm3, %v3167_v2 }
  0xa1   : > { %3602 = vmatmul.mubr.msk.bf16.gmra.mrb[4].mxu0 %vm351_vm3, %v3347_v8  ;;  %3537 = vmatprep.mubr.msk.bf16.mxu1 %vm351_vm3, %v3168_v11 }
  0xa2   : > { %3605 = vmatprep.mubr.msk.bf16.mxu0 %vm351_vm3, %v3348_v16 }
  0xa8   : > { %3538 = vmatmul.mubr.msk.bf16.gmra.mrb[12].mxu1 %vm351_vm3, %v3169_v4 }
  0xa9   : > { %3606 = vmatmul.mubr.msk.bf16.gmra.mrb[8].mxu0 %vm351_vm3, %v3349_v6 }
  0xaa   : > { %3609 = vmatprep.mubr.msk.bf16.mxu0 %vm351_vm3, %v3350_v32 }
  0xb1   : > { %3610 = vmatmul.mubr.msk.bf16.gmra.mrb[12].mxu0 %vm351_vm3, %v3351_v38 }
 0x153   : > { %v3509_v39 = vpop.f32.mrb[0].mxu1 }
 0x154   : > { %v1258_v40 = vpop.f32.mrb[1].mxu1 }
 0x155   : > { %v3510_v41 = vpop.f32.mrb[2].mxu1 }
 0x156   : > { %v1261_v42 = vpop.f32.mrb[3].mxu1 }
 0x15b   : > { %v3513_v45 = vpop.f32.mrb[4].mxu1 }
 0x15c   : > { %v1274_v43 = vpop.f32.mrb[5].mxu1 }
 0x15d   : > { %v3514_v44 = vpop.f32.mrb[6].mxu1 }
 0x15e   : > { %v1277_v46 = vpop.f32.mrb[7].mxu1 }
 0x16c   : > { %v3599_v47 = vpop.f32.mrb[0].mxu0 }
 0x16d   : > { %v3615_v51 = vadd.f32 %v3599_v47, %v3509_v39  ;;  %v2700_v49 = vpop.f32.mrb[1].mxu0 }
 0x16e   : > { %v3616_v52 = vadd.f32 %v2700_v49, %v1258_v40  ;;  %v3600_v53 = vpop.f32.mrb[2].mxu0 }
 0x16f   : > { %v2823_v54 = vadd.f32 %v3615_v51, %v4571_v48  ;;  %v3617_v55 = vadd.f32 %v3600_v53, %v3510_v41  ;;  %v2703_v57 = vpop.f32.mrb[3].mxu0 }
 0x170   : > { %v2821_v58 = vadd.f32 %v3616_v52, %v4571_v48  ;;  %v3618_v59 = vadd.f32 %v2703_v57, %v1261_v42 }
 0x171   : > { %v2839_v60 = vmax.f32 %v2823_v54, 0.0  ;;  %v2824_v61 = vadd.f32 %v3617_v55, %v4571_v48 }
 0x172   : > { %v2837_v62 = vmax.f32 %v2821_v58, 0.0  ;;  %v2822_v63 = vadd.f32 %v3618_v59, %v4571_v48 }
 0x173   : > { %2855 = vst [vmem:[%s4579_s5 + $0x10] sm:$0xff] %v2839_v60  ;;  %v2840_v0 = vmax.f32 %v2824_v61, 0.0  ;;  %v3535_v56 = vpop.f32.mrb[8].mxu1 }
 0x174   : > { %2853 = vst [vmem:[%s4579_s5] sm:$0xff] %v2837_v62  ;;  %v2838_v1 = vmax.f32 %v2822_v63, 0.0  ;;  %v3603_v3 = vpop.f32.mrb[4].mxu0  ;;  %v1592_v18 = vpop.f32.mrb[9].mxu1 }
 0x175   : > { %2856 = vst [vmem:[%s4579_s5 + $0x18] sm:$0xff] %v2840_v0  ;;  %v3619_v5 = vadd.f32 %v3603_v3, %v3513_v45  ;;  %v2716_v7 = vpop.f32.mrb[5].mxu0  ;;  %v3536_v8 = vpop.f32.mrb[10].mxu1 }
 0x176   : > { %2854 = vst [vmem:[%s4579_s5 + $0x8] sm:$0xff] %v2838_v1  ;;  %v3620_v2 = vadd.f32 %v2716_v7, %v1274_v43  ;;  %v3604_v9 = vpop.f32.mrb[6].mxu0  ;;  %v1595_v10 = vpop.f32.mrb[11].mxu1 }
 0x177   : > { %v2827_v11 = vadd.f32 %v3619_v5, %v4571_v48  ;;  %v3621_v13 = vadd.f32 %v3604_v9, %v3514_v44  ;;  %v2719_v14 = vpop.f32.mrb[7].mxu0 }
 0x178   : > { %v2825_v15 = vadd.f32 %v3620_v2, %v4571_v48  ;;  %v3622_v16 = vadd.f32 %v2719_v14, %v1277_v46 }
 0x179   : > { %v2843_v17 = vmax.f32 %v2827_v11, 0.0  ;;  %v2828_v12 = vadd.f32 %v3621_v13, %v4571_v48 }
 0x17a   : > { %v2841_v19 = vmax.f32 %v2825_v15, 0.0  ;;  %v2826_v20 = vadd.f32 %v3622_v16, %v4571_v48 }
 0x17b   : > { %2859 = vst [vmem:[%s4579_s5 + $0x30] sm:$0xff] %v2843_v17  ;;  %v2844_v21 = vmax.f32 %v2828_v12, 0.0  ;;  %v3539_v22 = vpop.f32.mrb[12].mxu1 }
 0x17c   : > { %2857 = vst [vmem:[%s4579_s5 + $0x20] sm:$0xff] %v2841_v19  ;;  %v2842_v23 = vmax.f32 %v2826_v20, 0.0  ;;  %v3607_v24 = vpop.f32.mrb[8].mxu0  ;;  %v1608_v25 = vpop.f32.mrb[13].mxu1 }
 0x17d   : > { %2860 = vst [vmem:[%s4579_s5 + $0x38] sm:$0xff] %v2844_v21  ;;  %v3623_v50 = vadd.f32 %v3607_v24, %v3535_v56  ;;  %v2732_v26 = vpop.f32.mrb[9].mxu0  ;;  %v3540_v27 = vpop.f32.mrb[14].mxu1 }
 0x17e   : > { %2858 = vst [vmem:[%s4579_s5 + $0x28] sm:$0xff] %v2842_v23  ;;  %v3624_v28 = vadd.f32 %v2732_v26, %v1592_v18  ;;  %v3608_v29 = vpop.f32.mrb[10].mxu0  ;;  %v1611_v30 = vpop.f32.mrb[15].mxu1 }
 0x17f   : > { %v2831_v31 = vadd.f32 %v3623_v50, %v4571_v48  ;;  %v3625_v4 = vadd.f32 %v3608_v29, %v3536_v8  ;;  %v2735_v6 = vpop.f32.mrb[11].mxu0 }
 0x180   : > { %v2829_v32 = vadd.f32 %v3624_v28, %v4571_v48  ;;  %v3626_v33 = vadd.f32 %v2735_v6, %v1595_v10 }
 0x181   : > { %v2847_v34 = vmax.f32 %v2831_v31, 0.0  ;;  %v2832_v35 = vadd.f32 %v3625_v4, %v4571_v48 }
 0x182   : > { %v2845_v36 = vmax.f32 %v2829_v32, 0.0  ;;  %v2830_v37 = vadd.f32 %v3626_v33, %v4571_v48 }
 0x183   : > { %2863 = vst [vmem:[%s4579_s5 + $0x50] sm:$0xff] %v2847_v34  ;;  %v2848_v38 = vmax.f32 %v2832_v35, 0.0 }
 0x184   : > { %2861 = vst [vmem:[%s4579_s5 + $0x40] sm:$0xff] %v2845_v36  ;;  %v2846_v39 = vmax.f32 %v2830_v37, 0.0  ;;  %v3611_v40 = vpop.f32.mrb[12].mxu0 }
 0x185   : > { %2864 = vst [vmem:[%s4579_s5 + $0x58] sm:$0xff] %v2848_v38  ;;  %v3627_v41 = vadd.f32 %v3611_v40, %v3539_v22  ;;  %v2748_v42 = vpop.f32.mrb[13].mxu0 }
 0x186   : > { %2862 = vst [vmem:[%s4579_s5 + $0x48] sm:$0xff] %v2846_v39  ;;  %v3628_v45 = vadd.f32 %v2748_v42, %v1608_v25  ;;  %v3612_v43 = vpop.f32.mrb[14].mxu0 }
 0x187   : > { %v2835_v44 = vadd.f32 %v3627_v41, %v4571_v48  ;;  %v3629_v46 = vadd.f32 %v3612_v43, %v3540_v27  ;;  %v2751_v47 = vpop.f32.mrb[15].mxu0 }
 0x188   : > { %v2833_v51 = vadd.f32 %v3628_v45, %v4571_v48  ;;  %v3630_v49 = vadd.f32 %v2751_v47, %v1611_v30 }
 0x189   : > { %v2851_v52 = vmax.f32 %v2835_v44, 0.0  ;;  %v2836_v53 = vadd.f32 %v3629_v46, %v4571_v48 }
 0x18a   : > { %v2849_v54 = vmax.f32 %v2833_v51, 0.0  ;;  %v2834_v55 = vadd.f32 %v3630_v49, %v4571_v48 }
 0x18b   : > { %2867 = vst [vmem:[%s4579_s5 + $0x70] sm:$0xff] %v2851_v52  ;;  %v2852_v57 = vmax.f32 %v2836_v53, 0.0 }
 0x18c   : > { %2865 = vst [vmem:[%s4579_s5 + $0x60] sm:$0xff] %v2849_v54  ;;  %v2850_v58 = vmax.f32 %v2834_v55, 0.0 }
 0x18d   : > { %2868 = vst [vmem:[%s4579_s5 + $0x78] sm:$0xff] %v2852_v57 }
 0x18e   : > { %2866 = vst [vmem:[%s4579_s5 + $0x68] sm:$0xff] %v2850_v58 }
 0x18f   : > { %3864 = shalt.err (!%p3861_p6)
}
 0x190   : > { %s3865_s27 = scalar_lea.hbm %s4612_s11, 2048  ;;  %s3869_s6 = scalar_lea.hbm %s4676_s3, 8192 }
 0x191   : > { %p3866_p7 = scmp.ne.s32.totalorder %s4612_s11, %s3865_s27  ;;  %p3870_p11 = scmp.lt.u32.totalorder %s4612_s11, %s4676_s3 }
 0x192   : > { %p3871_p12 = scmp.lt.u32.totalorder %s3869_s6, %s3865_s27  ;;  %p3873_p0 = scmp.lt.u32.totalorder %s3865_s27, %s4612_s11 }
 0x193   : > { %p3867_p9 = pnand %p3866_p7, %p4021_p3 }
 0x194   : > { %p3872_p13 = por %p3871_p12, %p3870_p11 }
 0x195   : > { %p3868_p10 = pneg %p3867_p9 }
 0x196   : > { %p3874_p1 = por %p3873_p0, %p3872_p13 }
 0x198   : > { %p3875_p2 = pnand %p3874_p1, %p3868_p10 }
 0x19a   : > { %3878 = shalt.err (!%p3875_p2)
}
 0x19b   : > { %s3948_s15 = smov 128   ;;  %s3949_s9 = smov 8  }
 0x19c   : > { %3754 = dma.vmem_to_hbm [thread:$0]  (%p4021_p3), %s4614_s16, 2048, %s4612_s11, %s4621_s20, %s3948_s15, %s3948_s15, %s3949_s9  }
 0x19d PF: > { %p3760_p4 = scmp.ge.s32.totalorder %s3945_s19, 2  ;;  %s2902_s10 = sand.u32 1, %s3917_s12  }
 0x19e   : > { %s2903_s21 = scalar_lea.sflag [#allocation4], %s2902_s10 }
 0x19f   : > { %p3757_p5 = pnand %p3760_p4, %p4030_p8 }
 0x1a1   : > { %3912 = dma.done.wait (!%p3757_p5), %s2903_s21, 2048  }
 0x1a2   : > { %3914 = vsyncadd (!%p3757_p5), %s2903_s21, 4294965248  ;;  %s16_s19 = sadd.s32 1, %s3945_s19   ;;  %s4683_s12 = smov %s3921_s13 }
 0x1a3   : > { %p13_p6 = scmp.ge.s32.totalorder %s16_s19, 6   ;;  %s4684_s13 = smov %s3925_s14 }
 0x1a4   : > { %s4685_s14 = smov %s4039_s30  ;;  %s4686_s15 = smov %s3937_s17 }
 0x1a5   : > { %s4687_s16 = smov %s3941_s18  ;;  %s4688_s17 = smov %s4691_s22 }
 0x1a6   : > { %s4689_s18 = smov %s4695_s23  ;;  %15 = sbr.rel (!%p13_p6) target bundleno = 5 (0x5), region = 92 }
 0x1ad   :  { %2908 = vsyncpa [#allocation4], 1 }
 0x1ae   :  { %2910 = vsyncpa [#allocation4 + $0x1], 1 }

</bundles_post_ra>
